<compile_context>
chip_gen: v7x
topology: tpu7x:2x2x1
jax: 0.10.0
libtpu: 0.0.40
codegen_flags: <defaults>
</compile_context>

<pallas_src>
import functools

import jax
import jax.numpy as jnp
from jax.experimental import pallas as pl
from jax.experimental.pallas import tpu as pltpu

_VMEM_LIMIT = 48 * 1024 * 1024
_LANES = 128


def _round_up(n, m):
    return ((n + m - 1) // m) * m


def _row_tile(m, max_rows=1024):
    """Largest row-tile that divides m, is sublane aligned and <= max_rows."""
    if m <= max_rows:
        return m
    for d in range(max_rows, 7, -1):
        if m % d == 0 and d % 8 == 0:
            return d
    return m


# --------------------------------------------------------------------------
# Fused conv kernel: per-image window, KH*KW tap loop, bf16 MXU matmuls with
# f32 accumulation, plus per-image channel sum / sum-of-squares for BN.
# --------------------------------------------------------------------------

def _conv_taps_kernel(x_ref, w_ref, o_ref, st_ref, *,
                      kh, kw, stride, n_px, hq, ho, wo):
    cout = w_ref.shape[2]
    acc = jnp.zeros((ho * wo, cout), jnp.float32)
    for ky in range(kh):
        for kx in range(kw):
            py, dy = ky % stride, ky // stride
            px, dx = kx % stride, kx // stride
            base = (py * n_px + px) * hq          # static phase offset along H
            a = x_ref[0, base + dy:base + dy + ho, dx:dx + wo, :]
            a = a.reshape(ho * wo, a.shape[-1]).astype(jnp.bfloat16)
            acc = acc + jnp.dot(a, w_ref[ky * kw + kx],
                                preferred_element_type=jnp.float32)
    o_ref[...] = acc.reshape(1, ho, wo, cout)
    # BN partial statistics: free VPU/XLU work while the output tile is live.
    s1 = jnp.sum(acc, axis=0, keepdims=True)
    s2 = jnp.sum(acc * acc, axis=0, keepdims=True)
    st_ref[...] = jnp.concatenate([s1, s2], axis=0).reshape(1, 2, cout)


def conv2d_fused(x, w_taps, kh, kw, stride, padding):
    """x: (B, H, W, C) f32 NHWC (C multiple of 128).
    w_taps: (KH*KW, C, Cout) bf16.  Returns (out, stats):
      out:   (B, Ho, Wo, Cout) f32
      stats: (B, 2, Cout) f32  -- per-image [sum, sum_sq] over spatial positions.
    """
    B, H, W, C = x.shape
    cout = w_taps.shape[2]
    assert w_taps.shape[0] == kh * kw and w_taps.shape[1] == C
    Ho = (H + 2 * padding - kh) // stride + 1
    Wo = (W + 2 * padding - kw) // stride + 1
    xp = x if padding == 0 else jnp.pad(
        x, ((0, 0), (padding, padding), (padding, padding), (0, 0)))
    # TODO(synk): the halo pad above is a separate XLA copy; it could be fused
    # into the producing elementwise kernel's output spec.

    n_py, n_px = min(stride, kh), min(stride, kw)
    Hq = Ho + (kh - 1) // stride
    Wq = Wo + (kw - 1) // stride
    if stride == 1:
        phases = xp                               # single phase, Hq == Hp
    else:
        # One-pass sub-pixel phase repack (total size == one copy of the input),
        # so the kernel only needs stride-1, statically-offset slices.
        phs = []
        for py in range(n_py):
            for px in range(n_px):
                sub = xp[:, py::stride, px::stride, :][:, :Hq, :Wq, :]
                ph, pw = sub.shape[1], sub.shape[2]
                if ph < Hq or pw < Wq:
                    sub = jnp.pad(sub, ((0, 0), (0, Hq - ph), (0, Wq - pw), (0, 0)))
                phs.append(sub)
        phases = jnp.concatenate(phs, axis=1)     # phases packed along H
    n_ph = n_py * n_px

    kern = functools.partial(_conv_taps_kernel, kh=kh, kw=kw, stride=stride,
                             n_px=n_px, hq=Hq, ho=Ho, wo=Wo)
    out, stats = pl.pallas_call(
        kern,
        out_shape=(jax.ShapeDtypeStruct((B, Ho, Wo, cout), jnp.float32),
                   jax.ShapeDtypeStruct((B, 2, cout), jnp.float32)),
        grid=(B,),
        in_specs=[pl.BlockSpec((1, n_ph * Hq, Wq, C), lambda b: (b, 0, 0, 0)),
                  pl.BlockSpec((kh * kw, C, cout), lambda b: (0, 0, 0))],
        out_specs=(pl.BlockSpec((1, Ho, Wo, cout), lambda b: (b, 0, 0, 0)),
                   pl.BlockSpec((1, 2, cout), lambda b: (b, 0, 0))),
        compiler_params=pltpu.CompilerParams(
            dimension_semantics=("parallel",),
            vmem_limit_bytes=_VMEM_LIMIT),
    )(phases, w_taps)
    return out, stats


# --------------------------------------------------------------------------
# BN apply kernels (tiled over rows). scale/shift are precomputed per channel
# from the fused statistics, so the kernels are pure elementwise affine (+ReLU,
# + fused residual-branch affine for the block output).
# --------------------------------------------------------------------------

def _bn_act_kernel(x_ref, sc_ref, sh_ref, o_ref, *, relu):
    y = x_ref[...] * sc_ref[...] + sh_ref[...]
    if relu:
        y = jnp.maximum(y, 0.0)
    o_ref[...] = y


def pallas_bn_act(x_mc, scale, shift, *, relu):
    M, C = x_mc.shape
    tm = _row_tile(M)
    return pl.pallas_call(
        functools.partial(_bn_act_kernel, relu=relu),
        out_shape=jax.ShapeDtypeStruct((M, C), jnp.float32),
        grid=(M // tm,),
        in_specs=[pl.BlockSpec((tm, C), lambda i: (i, 0)),
                  pl.BlockSpec((1, C), lambda i: (0, 0)),
                  pl.BlockSpec((1, C), lambda i: (0, 0))],
        out_specs=pl.BlockSpec((tm, C), lambda i: (i, 0)),
        compiler_params=pltpu.CompilerParams(
            dimension_semantics=("parallel",), vmem_limit_bytes=_VMEM_LIMIT),
    )(x_mc, scale, shift)


def _bn_add_act_kernel(x_ref, r_ref, sc_ref, sh_ref, rsc_ref, rsh_ref, o_ref):
    y = x_ref[...] * sc_ref[...] + sh_ref[...]
    y = y + r_ref[...] * rsc_ref[...] + rsh_ref[...]
    o_ref[...] = jnp.maximum(y, 0.0)


def pallas_bn_add_act(x_mc, res, scale, shift, rscale, rshift):
    """relu( BN_left(x) + BN_right(res) ) -- the fused block output."""
    M, C = x_mc.shape
    tm = _row_tile(M)
    return pl.pallas_call(
        _bn_add_act_kernel,
        out_shape=jax.ShapeDtypeStruct((M, C), jnp.float32),
        grid=(M // tm,),
        in_specs=[pl.BlockSpec((tm, C), lambda i: (i, 0)),
                  pl.BlockSpec((tm, C), lambda i: (i, 0)),
                  pl.BlockSpec((1, C), lambda i: (0, 0)),
                  pl.BlockSpec((1, C), lambda i: (0, 0)),
                  pl.BlockSpec((1, C), lambda i: (0, 0)),
                  pl.BlockSpec((1, C), lambda i: (0, 0))],
        out_specs=pl.BlockSpec((tm, C), lambda i: (i, 0)),
        compiler_params=pltpu.CompilerParams(
            dimension_semantics=("parallel",), vmem_limit_bytes=_VMEM_LIMIT),
    )(x_mc, res, scale, shift, rscale, rshift)


def _bn_scale_shift(stats, m, gamma, beta, eps):
    """Training-mode BN: fold mean/var (biased) into a per-channel affine."""
    tot = jnp.sum(stats.astype(jnp.float32), axis=0)       # (2, C)
    mean = tot[0] / m
    var = jnp.maximum(tot[1] / m - mean * mean, 0.0)
    scale = gamma / jnp.sqrt(eps + var)
    shift = beta - mean * scale
    c = gamma.shape[0]
    return scale.reshape(1, c), shift.reshape(1, c)


# --------------------------------------------------------------------------
# Parameter init (original shapes, for the reference) + kernel-side prep
# (channel padding to 128 lanes, tap reshape, bf16 weights).
# --------------------------------------------------------------------------

def _conv_init(key, kh, kw, cin, cout):
    fan_in = kh * kw * cin
    bound = 1.0 / (fan_in ** 0.5)
    return jax.random.uniform(key, (kh, kw, cin, cout), jnp.float32, -bound, bound)


def init_residual_block(key, in_feats, out_feats, first_stride):
    k1, k2, k3 = jax.random.split(key, 3)
    params = {
        "conv1": _conv_init(k1, 3, 3, in_feats, out_feats),
        "bn1_w": jnp.ones((out_feats,), jnp.float32),
        "bn1_b": jnp.zeros((out_feats,), jnp.float32),
        "conv2": _conv_init(k2, 3, 3, out_feats, out_feats),
        "bn2_w": jnp.ones((out_feats,), jnp.float32),
        "bn2_b": jnp.zeros((out_feats,), jnp.float32),
    }
    if first_stride > 1:
        params["convr"] = _conv_init(k3, 1, 1, in_feats, out_feats)
        params["bnr_w"] = jnp.ones((out_feats,), jnp.float32)
        params["bnr_b"] = jnp.zeros((out_feats,), jnp.float32)
    return params


def init_block_group(key, n_blocks, in_feats, out_feats, first_stride):
    keys = jax.random.split(key, n_blocks)
    blocks = [init_residual_block(keys[0], in_feats, out_feats, first_stride)]
    strides = [first_stride]
    for i in range(1, n_blocks):
        blocks.append(init_residual_block(keys[i], out_feats, out_feats, 1))
        strides.append(1)
    return blocks, strides


def _pad_conv_weight(w, cin_pad, cout_pad):
    kh, kw, cin, cout = w.shape
    wp = jnp.zeros((kh, kw, cin_pad, cout_pad), jnp.float32)
    wp = wp.at[:, :, :cin, :cout].set(w)
    return wp.reshape(kh * kw, cin_pad, cout_pad).astype(jnp.bfloat16)


def _pad_vec(v, n, fill):
    v = v.astype(jnp.float32)
    if v.shape[0] == n:
        return v
    return jnp.concatenate([v, jnp.full((n - v.shape[0],), fill, jnp.float32)])


def prepare_block_group(raw_blocks, in_feats, out_feats):
    cpin0 = _round_up(in_feats, _LANES)
    cpout = _round_up(out_feats, _LANES)
    kblocks = []
    for i, p in enumerate(raw_blocks):
        cpin = cpin0 if i == 0 else cpout
        kp = {
            "conv1": _pad_conv_weight(p["conv1"], cpin, cpout),
            "bn1_w": _pad_vec(p["bn1_w"], cpout, 1.0),
            "bn1_b": _pad_vec(p["bn1_b"], cpout, 0.0),
            "conv2": _pad_conv_weight(p["conv2"], cpout, cpout),
            "bn2_w": _pad_vec(p["bn2_w"], cpout, 1.0),
            "bn2_b": _pad_vec(p["bn2_b"], cpout, 0.0),
        }
        if "convr" in p:
            kp["convr"] = _pad_conv_weight(p["convr"], cpin, cpout)
            kp["bnr_w"] = _pad_vec(p["bnr_w"], cpout, 1.0)
            kp["bnr_b"] = _pad_vec(p["bnr_b"], cpout, 0.0)
        kblocks.append(kp)
    return kblocks


# --------------------------------------------------------------------------
# Forward pass
# --------------------------------------------------------------------------

def residual_block_forward(kp, x, stride, eps=1e-5):
    """x: (B, H, W, Cp) f32, channels already padded to 128."""
    cpout = kp["conv1"].shape[2]

    # left branch: conv3x3(stride) [+BN stats] -> BN+ReLU -> conv3x3 [+BN stats]
    h1, st1 = conv2d_fused(x, kp["conv1"], 3, 3, stride, 1)
    Bo, Ho, Wo, _ = h1.shape
    M = Bo * Ho * Wo
    sc1, sh1 = _bn_scale_shift(st1, M, kp["bn1_w"], kp["bn1_b"], eps)
    a1 = pallas_bn_act(h1.reshape(M, cpout), sc1, sh1, relu=True)

    h2, st2 = conv2d_fused(a1.reshape(Bo, Ho, Wo, cpout), kp["conv2"], 3, 3, 1, 1)
    sc2, sh2 = _bn_scale_shift(st2, M, kp["bn2_w"], kp["bn2_b"], eps)

    # right branch: identity, or conv1x1(stride) + BN (BN fused into final kernel)
    if "convr" in kp:
        r, stR = conv2d_fused(x, kp["convr"], 1, 1, stride, 0)
        scr, shr = _bn_scale_shift(stR, M, kp["bnr_w"], kp["bnr_b"], eps)
        res = r.reshape(M, cpout)
    else:
        assert x.shape[-1] == cpout, "identity residual requires in_feats == out_feats"
        res = x.reshape(M, cpout)
        scr = jnp.ones((1, cpout), jnp.float32)
        shr = jnp.zeros((1, cpout), jnp.float32)

    out = pallas_bn_add_act(h2.reshape(M, cpout), res, sc2, sh2, scr, shr)
    return out.reshape(Bo, Ho, Wo, cpout)


def block_group_forward(kblocks, strides, x_nchw, out_feats):
    """x: (B, in_feats, H, W) -> (B, out_feats, H/first_stride, W/first_stride)."""
    x = jnp.transpose(x_nchw, (0, 2, 3, 1)).astype(jnp.float32)   # NCHW -> NHWC
    B, H, W, Cin = x.shape
    cpin = _round_up(Cin, _LANES)
    if cpin > Cin:                     # lane-dense channels, padded once here
        x = jnp.pad(x, ((0, 0), (0, 0), (0, 0), (0, cpin - Cin)))
    for p, s in zip(kblocks, strides):
        x = residual_block_forward(p, x, s)
    x = x[..., :out_feats]
    return jnp.transpose(x, (0, 3, 1, 2))                         # NHWC -> NCHW

# TODO(synk): running_mean / running_var / num_batches_tracked buffer updates
# are training-time side effects that do not influence the returned tensor,
# so they are not materialized here.


# --------------------------------------------------------------------------
# Pure-JAX reference (bf16 conv inputs, f32 accumulation -- same dtype policy
# as the kernels, so the check isolates kernel-structure correctness).
# --------------------------------------------------------------------------

def _ref_conv(x, w, stride, padding):
    return jax.lax.conv_general_dilated(
        x.astype(jnp.bfloat16), w.astype(jnp.bfloat16),
        (stride, stride), [(padding, padding)] * 2,
        dimension_numbers=("NHWC", "HWIO", "NHWC"),
        preferred_element_type=jnp.float32)


def _ref_bn(x, w, b, eps=1e-5, relu=False):
    mean = jnp.mean(x, axis=(0, 1, 2), keepdims=True)
    var = jnp.mean(jnp.square(x - mean), axis=(0, 1, 2), keepdims=True)
    y = (x - mean) / jnp.sqrt(eps + var) * w + b
    return jnp.maximum(y, 0.0) if relu else y


def _ref_block(p, x, s):
    h = _ref_bn(_ref_conv(x, p["conv1"], s, 1), p["bn1_w"], p["bn1_b"], relu=True)
    left = _ref_bn(_ref_conv(h, p["conv2"], 1, 1), p["bn2_w"], p["bn2_b"])
    if s == 1:
        right = x
    else:
        right = _ref_bn(_ref_conv(x, p["convr"], s, 0), p["bnr_w"], p["bnr_b"])
    return jnp.maximum(left + right, 0.0)


# --------------------------------------------------------------------------
# Main
# --------------------------------------------------------------------------

if __name__ == "__main__":
    key = jax.random.PRNGKey(0)
    kx, kp = jax.random.split(key)

    B, Cin, H, W = 2, 4, 16, 16
    n_blocks, out_feats, first_stride = 2, 8, 2

    x = jax.random.normal(kx, (B, Cin, H, W), jnp.float32)
    raw_blocks, strides = init_block_group(kp, n_blocks, Cin, out_feats, first_stride)
    kblocks = prepare_block_group(raw_blocks, Cin, out_feats)

    fwd = jax.jit(lambda blocks, xin: block_group_forward(blocks, strides, xin, out_feats))
    out = jax.block_until_ready(fwd(kblocks, x))
    assert out.shape == (B, out_feats, H // first_stride, W // first_stride), out.shape

    # sanity check against a pure-JAX reference with the same dtype policy
    xh = jnp.transpose(x, (0, 2, 3, 1))
    for p, s in zip(raw_blocks, strides):
        xh = _ref_block(p, xh, s)
    ref = jnp.transpose(xh, (0, 3, 1, 2))
    err = float(jnp.max(jnp.abs(out - ref)))
    assert err < 5e-3, f"max abs err {err}"

    print("KERNEL_OK")
</pallas_src>

<mosaic_0001>
module attributes {stable_mosaic.version = 11 : i64} {
  func.func @_conv_taps_kernel(%arg0: i32, %arg1: memref<1x8x8x128xf32, #tpu.memory_space<vmem>>, %arg2: memref<1x128x128xbf16, #tpu.memory_space<vmem>>, %arg3: memref<1x8x8x128xf32, #tpu.memory_space<vmem>>, %arg4: memref<1x2x128xf32, #tpu.memory_space<vmem>>) attributes {dimension_semantics = [#tpu.dimension_semantics<parallel>], iteration_bounds = array<i64: 2>, scalar_prefetch = 0 : i64, scratch_operands = 0 : i64, tpu.core_type = #tpu.core_type<tc>, window_params = [{transform_indices = @transform_0, window_bounds = array<i64: 1, 8, 8, 128>}, {pipeline_mode = #tpu.pipeline_mode<synchronous>, transform_indices = @transform_1, window_bounds = array<i64: 1, 128, 128>}, {transform_indices = @transform_2, window_bounds = array<i64: 1, 8, 8, 128>}, {transform_indices = @transform_3, window_bounds = array<i64: 1, 2, 128>}]} {
    %cst = arith.constant 0.000000e+00 : f32
    %0 = vector.broadcast %cst : f32 to vector<64x128xf32>
    %c0 = arith.constant 0 : index
    %c0_0 = arith.constant 0 : index
    %c0_1 = arith.constant 0 : index
    %c0_2 = arith.constant 0 : index
    %1 = vector.load %arg1[%c0, %c0_0, %c0_1, %c0_2] : memref<1x8x8x128xf32, #tpu.memory_space<vmem>>, vector<1x8x8x128xf32>
    %2 = vector.shape_cast %1 : vector<1x8x8x128xf32> to vector<8x8x128xf32>
    %3 = vector.shape_cast %2 : vector<8x8x128xf32> to vector<64x128xf32>
    %4 = arith.truncf %3 : vector<64x128xf32> to vector<64x128xbf16>
    %c0_3 = arith.constant 0 : index
    %c0_4 = arith.constant 0 : index
    %c0_5 = arith.constant 0 : index
    %5 = vector.load %arg2[%c0_3, %c0_4, %c0_5] : memref<1x128x128xbf16, #tpu.memory_space<vmem>>, vector<1x128x128xbf16>
    %6 = vector.shape_cast %5 : vector<1x128x128xbf16> to vector<128x128xbf16>
    %cst_6 = arith.constant dense<0.000000e+00> : vector<64x128xf32>
    %7 = tpu.matmul %4, %6, %cst_6 {dimension_numbers = #tpu.dot_dimension_numbers<[1], [0], [0], [1], [0, 0, 1, 1], [], []>} : vector<64x128xbf16>, vector<128x128xbf16>, vector<64x128xf32> -> vector<64x128xf32>
    %8 = arith.addf %0, %7 : vector<64x128xf32>
    %9 = vector.shape_cast %8 : vector<64x128xf32> to vector<1x8x8x128xf32>
    %c0_7 = arith.constant 0 : index
    %c0_8 = arith.constant 0 : index
    %c0_9 = arith.constant 0 : index
    %c0_10 = arith.constant 0 : index
    %10 = vector.load %arg3[%c0_7, %c0_8, %c0_9, %c0_10] : memref<1x8x8x128xf32, #tpu.memory_space<vmem>>, vector<1x8x8x128xf32>
    tpu.vector_store %arg3[%c0_7, %c0_8, %c0_9, %c0_10], %9 {strides = array<i32>} : memref<1x8x8x128xf32, #tpu.memory_space<vmem>>, vector<1x8x8x128xf32>,
    %cst_11 = arith.constant dense<0.000000e+00> : vector<128xf32>
    %11 = vector.multi_reduction <add>, %8, %cst_11 [0] : vector<64x128xf32> to vector<128xf32>
    %12 = vector.shape_cast %11 : vector<128xf32> to vector<1x128xf32>
    %13 = arith.mulf %8, %8 : vector<64x128xf32>
    %cst_12 = arith.constant dense<0.000000e+00> : vector<128xf32>
    %14 = vector.multi_reduction <add>, %13, %cst_12 [0] : vector<64x128xf32> to vector<128xf32>
    %15 = vector.shape_cast %14 : vector<128xf32> to vector<1x128xf32>
    %16 = tpu.concatenate %12, %15 in 0 : vector<1x128xf32>, vector<1x128xf32> -> vector<2x128xf32>
    %17 = vector.shape_cast %16 : vector<2x128xf32> to vector<1x2x128xf32>
    %c0_13 = arith.constant 0 : index
    %c0_14 = arith.constant 0 : index
    %c0_15 = arith.constant 0 : index
    %18 = vector.load %arg4[%c0_13, %c0_14, %c0_15] : memref<1x2x128xf32, #tpu.memory_space<vmem>>, vector<1x2x128xf32>
    tpu.vector_store %arg4[%c0_13, %c0_14, %c0_15], %17 {strides = array<i32>} : memref<1x2x128xf32, #tpu.memory_space<vmem>>, vector<1x2x128xf32>,
    return
  }
  func.func @transform_0(%arg0: i32) -> (i32, i32, i32, i32) {
    %c0_i32 = arith.constant 0 : i32
    %c0_i32_0 = arith.constant 0 : i32
    %c0_i32_1 = arith.constant 0 : i32
    %c0_i32_2 = arith.constant 0 : i32
    return %arg0, %c0_i32, %c0_i32_0, %c0_i32_1 : i32, i32, i32, i32
  }
  func.func @transform_1(%arg0: i32) -> (i32, i32, i32) {
    %c0_i32 = arith.constant 0 : i32
    %c0_i32_0 = arith.constant 0 : i32
    %c0_i32_1 = arith.constant 0 : i32
    %c0_i32_2 = arith.constant 0 : i32
    return %c0_i32, %c0_i32_0, %c0_i32_1 : i32, i32, i32
  }
  func.func @transform_2(%arg0: i32) -> (i32, i32, i32, i32) {
    %c0_i32 = arith.constant 0 : i32
    %c0_i32_0 = arith.constant 0 : i32
    %c0_i32_1 = arith.constant 0 : i32
    %c0_i32_2 = arith.constant 0 : i32
    return %arg0, %c0_i32, %c0_i32_0, %c0_i32_1 : i32, i32, i32, i32
  }
  func.func @transform_3(%arg0: i32) -> (i32, i32, i32) {
    %c0_i32 = arith.constant 0 : i32
    %c0_i32_0 = arith.constant 0 : i32
    %c0_i32_1 = arith.constant 0 : i32
    return %arg0, %c0_i32, %c0_i32_0 : i32, i32, i32
  }
}

module attributes {stable_mosaic.version = 11 : i64} {
  func.func @_conv_taps_kernel(%arg0: i32, %arg1: memref<1x36x9x128xf32, #tpu.memory_space<vmem>>, %arg2: memref<9x128x128xbf16, #tpu.memory_space<vmem>>, %arg3: memref<1x8x8x128xf32, #tpu.memory_space<vmem>>, %arg4: memref<1x2x128xf32, #tpu.memory_space<vmem>>) attributes {dimension_semantics = [#tpu.dimension_semantics<parallel>], iteration_bounds = array<i64: 2>, scalar_prefetch = 0 : i64, scratch_operands = 0 : i64, tpu.core_type = #tpu.core_type<tc>, window_params = [{transform_indices = @transform_0, window_bounds = array<i64: 1, 36, 9, 128>}, {pipeline_mode = #tpu.pipeline_mode<synchronous>, transform_indices = @transform_1, window_bounds = array<i64: 9, 128, 128>}, {transform_indices = @transform_2, window_bounds = array<i64: 1, 8, 8, 128>}, {transform_indices = @transform_3, window_bounds = array<i64: 1, 2, 128>}]} {
    %cst = arith.constant 0.000000e+00 : f32
    %0 = vector.broadcast %cst : f32 to vector<64x128xf32>
    %c0 = arith.constant 0 : index
    %c0_0 = arith.constant 0 : index
    %c0_1 = arith.constant 0 : index
    %c0_2 = arith.constant 0 : index
    %1 = vector.load %arg1[%c0, %c0_0, %c0_1, %c0_2] : memref<1x36x9x128xf32, #tpu.memory_space<vmem>>, vector<1x8x8x128xf32>
    %2 = vector.shape_cast %1 : vector<1x8x8x128xf32> to vector<8x8x128xf32>
    %3 = vector.shape_cast %2 : vector<8x8x128xf32> to vector<64x128xf32>
    %4 = arith.truncf %3 : vector<64x128xf32> to vector<64x128xbf16>
    %c0_3 = arith.constant 0 : index
    %c0_4 = arith.constant 0 : index
    %c0_5 = arith.constant 0 : index
    %5 = vector.load %arg2[%c0_3, %c0_4, %c0_5] : memref<9x128x128xbf16, #tpu.memory_space<vmem>>, vector<1x128x128xbf16>
    %6 = vector.shape_cast %5 : vector<1x128x128xbf16> to vector<128x128xbf16>
    %cst_6 = arith.constant dense<0.000000e+00> : vector<64x128xf32>
    %7 = tpu.matmul %4, %6, %cst_6 {dimension_numbers = #tpu.dot_dimension_numbers<[1], [0], [0], [1], [0, 0, 1, 1], [], []>} : vector<64x128xbf16>, vector<128x128xbf16>, vector<64x128xf32> -> vector<64x128xf32>
    %8 = arith.addf %0, %7 : vector<64x128xf32>
    %c0_7 = arith.constant 0 : index
    %c9 = arith.constant 9 : index
    %c0_8 = arith.constant 0 : index
    %c0_9 = arith.constant 0 : index
    %9 = vector.load %arg1[%c0_7, %c9, %c0_8, %c0_9] : memref<1x36x9x128xf32, #tpu.memory_space<vmem>>, vector<1x8x8x128xf32>
    %10 = vector.shape_cast %9 : vector<1x8x8x128xf32> to vector<8x8x128xf32>
    %11 = vector.shape_cast %10 : vector<8x8x128xf32> to vector<64x128xf32>
    %12 = arith.truncf %11 : vector<64x128xf32> to vector<64x128xbf16>
    %c1 = arith.constant 1 : index
    %c0_10 = arith.constant 0 : index
    %c0_11 = arith.constant 0 : index
    %13 = vector.load %arg2[%c1, %c0_10, %c0_11] : memref<9x128x128xbf16, #tpu.memory_space<vmem>>, vector<1x128x128xbf16>
    %14 = vector.shape_cast %13 : vector<1x128x128xbf16> to vector<128x128xbf16>
    %cst_12 = arith.constant dense<0.000000e+00> : vector<64x128xf32>
    %15 = tpu.matmul %12, %14, %cst_12 {dimension_numbers = #tpu.dot_dimension_numbers<[1], [0], [0], [1], [0, 0, 1, 1], [], []>} : vector<64x128xbf16>, vector<128x128xbf16>, vector<64x128xf32> -> vector<64x128xf32>
    %16 = arith.addf %8, %15 : vector<64x128xf32>
    %c0_13 = arith.constant 0 : index
    %c0_14 = arith.constant 0 : index
    %c1_15 = arith.constant 1 : index
    %c0_16 = arith.constant 0 : index
    %17 = vector.load %arg1[%c0_13, %c0_14, %c1_15, %c0_16] : memref<1x36x9x128xf32, #tpu.memory_space<vmem>>, vector<1x8x8x128xf32>
    %18 = vector.shape_cast %17 : vector<1x8x8x128xf32> to vector<8x8x128xf32>
    %19 = vector.shape_cast %18 : vector<8x8x128xf32> to vector<64x128xf32>
    %20 = arith.truncf %19 : vector<64x128xf32> to vector<64x128xbf16>
    %c2 = arith.constant 2 : index
    %c0_17 = arith.constant 0 : index
    %c0_18 = arith.constant 0 : index
    %21 = vector.load %arg2[%c2, %c0_17, %c0_18] : memref<9x128x128xbf16, #tpu.memory_space<vmem>>, vector<1x128x128xbf16>
    %22 = vector.shape_cast %21 : vector<1x128x128xbf16> to vector<128x128xbf16>
    %cst_19 = arith.constant dense<0.000000e+00> : vector<64x128xf32>
    %23 = tpu.matmul %20, %22, %cst_19 {dimension_numbers = #tpu.dot_dimension_numbers<[1], [0], [0], [1], [0, 0, 1, 1], [], []>} : vector<64x128xbf16>, vector<128x128xbf16>, vector<64x128xf32> -> vector<64x128xf32>
    %24 = arith.addf %16, %23 : vector<64x128xf32>
    %c0_20 = arith.constant 0 : index
    %c18 = arith.constant 18 : index
    %c0_21 = arith.constant 0 : index
    %c0_22 = arith.constant 0 : index
    %25 = vector.load %arg1[%c0_20, %c18, %c0_21, %c0_22] : memref<1x36x9x128xf32, #tpu.memory_space<vmem>>, vector<1x8x8x128xf32>
    %26 = vector.shape_cast %25 : vector<1x8x8x128xf32> to vector<8x8x128xf32>
    %27 = vector.shape_cast %26 : vector<8x8x128xf32> to vector<64x128xf32>
    %28 = arith.truncf %27 : vector<64x128xf32> to vector<64x128xbf16>
    %c3 = arith.constant 3 : index
    %c0_23 = arith.constant 0 : index
    %c0_24 = arith.constant 0 : index
    %29 = vector.load %arg2[%c3, %c0_23, %c0_24] : memref<9x128x128xbf16, #tpu.memory_space<vmem>>, vector<1x128x128xbf16>
    %30 = vector.shape_cast %29 : vector<1x128x128xbf16> to vector<128x128xbf16>
    %cst_25 = arith.constant dense<0.000000e+00> : vector<64x128xf32>
    %31 = tpu.matmul %28, %30, %cst_25 {dimension_numbers = #tpu.dot_dimension_numbers<[1], [0], [0], [1], [0, 0, 1, 1], [], []>} : vector<64x128xbf16>, vector<128x128xbf16>, vector<64x128xf32> -> vector<64x128xf32>
    %32 = arith.addf %24, %31 : vector<64x128xf32>
    %c0_26 = arith.constant 0 : index
    %c27 = arith.constant 27 : index
    %c0_27 = arith.constant 0 : index
    %c0_28 = arith.constant 0 : index
    %33 = vector.load %arg1[%c0_26, %c27, %c0_27, %c0_28] : memref<1x36x9x128xf32, #tpu.memory_space<vmem>>, vector<1x8x8x128xf32>
    %34 = vector.shape_cast %33 : vector<1x8x8x128xf32> to vector<8x8x128xf32>
    %35 = vector.shape_cast %34 : vector<8x8x128xf32> to vector<64x128xf32>
    %36 = arith.truncf %35 : vector<64x128xf32> to vector<64x128xbf16>
    %c4 = arith.constant 4 : index
    %c0_29 = arith.constant 0 : index
    %c0_30 = arith.constant 0 : index
    %37 = vector.load %arg2[%c4, %c0_29, %c0_30] : memref<9x128x128xbf16, #tpu.memory_space<vmem>>, vector<1x128x128xbf16>
    %38 = vector.shape_cast %37 : vector<1x128x128xbf16> to vector<128x128xbf16>
    %cst_31 = arith.constant dense<0.000000e+00> : vector<64x128xf32>
    %39 = tpu.matmul %36, %38, %cst_31 {dimension_numbers = #tpu.dot_dimension_numbers<[1], [0], [0], [1], [0, 0, 1, 1], [], []>} : vector<64x128xbf16>, vector<128x128xbf16>, vector<64x128xf32> -> vector<64x128xf32>
    %40 = arith.addf %32, %39 : vector<64x128xf32>
    %c0_32 = arith.constant 0 : index
    %c18_33 = arith.constant 18 : index
    %c1_34 = arith.constant 1 : index
    %c0_35 = arith.constant 0 : index
    %41 = vector.load %arg1[%c0_32, %c18_33, %c1_34, %c0_35] : memref<1x36x9x128xf32, #tpu.memory_space<vmem>>, vector<1x8x8x128xf32>
    %42 = vector.shape_cast %41 : vector<1x8x8x128xf32> to vector<8x8x128xf32>
    %43 = vector.shape_cast %42 : vector<8x8x128xf32> to vector<64x128xf32>
    %44 = arith.truncf %43 : vector<64x128xf32> to vector<64x128xbf16>
    %c5 = arith.constant 5 : index
    %c0_36 = arith.constant 0 : index
    %c0_37 = arith.constant 0 : index
    %45 = vector.load %arg2[%c5, %c0_36, %c0_37] : memref<9x128x128xbf16, #tpu.memory_space<vmem>>, vector<1x128x128xbf16>
    %46 = vector.shape_cast %45 : vector<1x128x128xbf16> to vector<128x128xbf16>
    %cst_38 = arith.constant dense<0.000000e+00> : vector<64x128xf32>
    %47 = tpu.matmul %44, %46, %cst_38 {dimension_numbers = #tpu.dot_dimension_numbers<[1], [0], [0], [1], [0, 0, 1, 1], [], []>} : vector<64x128xbf16>, vector<128x128xbf16>, vector<64x128xf32> -> vector<64x128xf32>
    %48 = arith.addf %40, %47 : vector<64x128xf32>
    %c0_39 = arith.constant 0 : index
    %c1_40 = arith.constant 1 : index
    %c0_41 = arith.constant 0 : index
    %c0_42 = arith.constant 0 : index
    %49 = vector.load %arg1[%c0_39, %c1_40, %c0_41, %c0_42] : memref<1x36x9x128xf32, #tpu.memory_space<vmem>>, vector<1x8x8x128xf32>
    %50 = vector.shape_cast %49 : vector<1x8x8x128xf32> to vector<8x8x128xf32>
    %51 = vector.shape_cast %50 : vector<8x8x128xf32> to vector<64x128xf32>
    %52 = arith.truncf %51 : vector<64x128xf32> to vector<64x128xbf16>
    %c6 = arith.constant 6 : index
    %c0_43 = arith.constant 0 : index
    %c0_44 = arith.constant 0 : index
    %53 = vector.load %arg2[%c6, %c0_43, %c0_44] : memref<9x128x128xbf16, #tpu.memory_space<vmem>>, vector<1x128x128xbf16>
    %54 = vector.shape_cast %53 : vector<1x128x128xbf16> to vector<128x128xbf16>
    %cst_45 = arith.constant dense<0.000000e+00> : vector<64x128xf32>
    %55 = tpu.matmul %52, %54, %cst_45 {dimension_numbers = #tpu.dot_dimension_numbers<[1], [0], [0], [1], [0, 0, 1, 1], [], []>} : vector<64x128xbf16>, vector<128x128xbf16>, vector<64x128xf32> -> vector<64x128xf32>
    %56 = arith.addf %48, %55 : vector<64x128xf32>
    %c0_46 = arith.constant 0 : index
    %c10 = arith.constant 10 : index
    %c0_47 = arith.constant 0 : index
    %c0_48 = arith.constant 0 : index
    %57 = vector.load %arg1[%c0_46, %c10, %c0_47, %c0_48] : memref<1x36x9x128xf32, #tpu.memory_space<vmem>>, vector<1x8x8x128xf32>
    %58 = vector.shape_cast %57 : vector<1x8x8x128xf32> to vector<8x8x128xf32>
    %59 = vector.shape_cast %58 : vector<8x8x128xf32> to vector<64x128xf32>
    %60 = arith.truncf %59 : vector<64x128xf32> to vector<64x128xbf16>
    %c7 = arith.constant 7 : index
    %c0_49 = arith.constant 0 : index
    %c0_50 = arith.constant 0 : index
    %61 = vector.load %arg2[%c7, %c0_49, %c0_50] : memref<9x128x128xbf16, #tpu.memory_space<vmem>>, vector<1x128x128xbf16>
    %62 = vector.shape_cast %61 : vector<1x128x128xbf16> to vector<128x128xbf16>
    %cst_51 = arith.constant dense<0.000000e+00> : vector<64x128xf32>
    %63 = tpu.matmul %60, %62, %cst_51 {dimension_numbers = #tpu.dot_dimension_numbers<[1], [0], [0], [1], [0, 0, 1, 1], [], []>} : vector<64x128xbf16>, vector<128x128xbf16>, vector<64x128xf32> -> vector<64x128xf32>
    %64 = arith.addf %56, %63 : vector<64x128xf32>
    %c0_52 = arith.constant 0 : index
    %c1_53 = arith.constant 1 : index
    %c1_54 = arith.constant 1 : index
    %c0_55 = arith.constant 0 : index
    %65 = vector.load %arg1[%c0_52, %c1_53, %c1_54, %c0_55] : memref<1x36x9x128xf32, #tpu.memory_space<vmem>>, vector<1x8x8x128xf32>
    %66 = vector.shape_cast %65 : vector<1x8x8x128xf32> to vector<8x8x128xf32>
    %67 = vector.shape_cast %66 : vector<8x8x128xf32> to vector<64x128xf32>
    %68 = arith.truncf %67 : vector<64x128xf32> to vector<64x128xbf16>
    %c8 = arith.constant 8 : index
    %c0_56 = arith.constant 0 : index
    %c0_57 = arith.constant 0 : index
    %69 = vector.load %arg2[%c8, %c0_56, %c0_57] : memref<9x128x128xbf16, #tpu.memory_space<vmem>>, vector<1x128x128xbf16>
    %70 = vector.shape_cast %69 : vector<1x128x128xbf16> to vector<128x128xbf16>
    %cst_58 = arith.constant dense<0.000000e+00> : vector<64x128xf32>
    %71 = tpu.matmul %68, %70, %cst_58 {dimension_numbers = #tpu.dot_dimension_numbers<[1], [0], [0], [1], [0, 0, 1, 1], [], []>} : vector<64x128xbf16>, vector<128x128xbf16>, vector<64x128xf32> -> vector<64x128xf32>
    %72 = arith.addf %64, %71 : vector<64x128xf32>
    %73 = vector.shape_cast %72 : vector<64x128xf32> to vector<1x8x8x128xf32>
    %c0_59 = arith.constant 0 : index
    %c0_60 = arith.constant 0 : index
    %c0_61 = arith.constant 0 : index
    %c0_62 = arith.constant 0 : index
    %74 = vector.load %arg3[%c0_59, %c0_60, %c0_61, %c0_62] : memref<1x8x8x128xf32, #tpu.memory_space<vmem>>, vector<1x8x8x128xf32>
    tpu.vector_store %arg3[%c0_59, %c0_60, %c0_61, %c0_62], %73 {strides = array<i32>} : memref<1x8x8x128xf32, #tpu.memory_space<vmem>>, vector<1x8x8x128xf32>,
    %cst_63 = arith.constant dense<0.000000e+00> : vector<128xf32>
    %75 = vector.multi_reduction <add>, %72, %cst_63 [0] : vector<64x128xf32> to vector<128xf32>
    %76 = vector.shape_cast %75 : vector<128xf32> to vector<1x128xf32>
    %77 = arith.mulf %72, %72 : vector<64x128xf32>
    %cst_64 = arith.constant dense<0.000000e+00> : vector<128xf32>
    %78 = vector.multi_reduction <add>, %77, %cst_64 [0] : vector<64x128xf32> to vector<128xf32>
    %79 = vector.shape_cast %78 : vector<128xf32> to vector<1x128xf32>
    %80 = tpu.concatenate %76, %79 in 0 : vector<1x128xf32>, vector<1x128xf32> -> vector<2x128xf32>
    %81 = vector.shape_cast %80 : vector<2x128xf32> to vector<1x2x128xf32>
    %c0_65 = arith.constant 0 : index
    %c0_66 = arith.constant 0 : index
    %c0_67 = arith.constant 0 : index
    %82 = vector.load %arg4[%c0_65, %c0_66, %c0_67] : memref<1x2x128xf32, #tpu.memory_space<vmem>>, vector<1x2x128xf32>
    tpu.vector_store %arg4[%c0_65, %c0_66, %c0_67], %81 {strides = array<i32>} : memref<1x2x128xf32, #tpu.memory_space<vmem>>, vector<1x2x128xf32>,
    return
  }
  func.func @transform_0(%arg0: i32) -> (i32, i32, i32, i32) {
    %c0_i32 = arith.constant 0 : i32
    %c0_i32_0 = arith.constant 0 : i32
    %c0_i32_1 = arith.constant 0 : i32
    %c0_i32_2 = arith.constant 0 : i32
    return %arg0, %c0_i32, %c0_i32_0, %c0_i32_1 : i32, i32, i32, i32
  }
  func.func @transform_1(%arg0: i32) -> (i32, i32, i32) {
    %c0_i32 = arith.constant 0 : i32
    %c0_i32_0 = arith.constant 0 : i32
    %c0_i32_1 = arith.constant 0 : i32
    %c0_i32_2 = arith.constant 0 : i32
    return %c0_i32, %c0_i32_0, %c0_i32_1 : i32, i32, i32
  }
  func.func @transform_2(%arg0: i32) -> (i32, i32, i32, i32) {
    %c0_i32 = arith.constant 0 : i32
    %c0_i32_0 = arith.constant 0 : i32
    %c0_i32_1 = arith.constant 0 : i32
    %c0_i32_2 = arith.constant 0 : i32
    return %arg0, %c0_i32, %c0_i32_0, %c0_i32_1 : i32, i32, i32, i32
  }
  func.func @transform_3(%arg0: i32) -> (i32, i32, i32) {
    %c0_i32 = arith.constant 0 : i32
    %c0_i32_0 = arith.constant 0 : i32
    %c0_i32_1 = arith.constant 0 : i32
    return %arg0, %c0_i32, %c0_i32_0 : i32, i32, i32
  }
}

module attributes {stable_mosaic.version = 11 : i64} {
  func.func @_bn_act_kernel(%arg0: i32, %arg1: memref<128x128xf32, #tpu.memory_space<vmem>>, %arg2: memref<1x128xf32, #tpu.memory_space<vmem>>, %arg3: memref<1x128xf32, #tpu.memory_space<vmem>>, %arg4: memref<128x128xf32, #tpu.memory_space<vmem>>) attributes {dimension_semantics = [#tpu.dimension_semantics<parallel>], iteration_bounds = array<i64: 1>, scalar_prefetch = 0 : i64, scratch_operands = 0 : i64, tpu.core_type = #tpu.core_type<tc>, window_params = [{transform_indices = @transform_0, window_bounds = array<i64: 128, 128>}, {pipeline_mode = #tpu.pipeline_mode<synchronous>, transform_indices = @transform_1, window_bounds = array<i64: 1, 128>}, {pipeline_mode = #tpu.pipeline_mode<synchronous>, transform_indices = @transform_2, window_bounds = array<i64: 1, 128>}, {transform_indices = @transform_3, window_bounds = array<i64: 128, 128>}]} {
    %c0 = arith.constant 0 : index
    %c0_0 = arith.constant 0 : index
    %0 = vector.load %arg1[%c0, %c0_0] : memref<128x128xf32, #tpu.memory_space<vmem>>, vector<128x128xf32>
    %c0_1 = arith.constant 0 : index
    %c0_2 = arith.constant 0 : index
    %1 = vector.load %arg2[%c0_1, %c0_2] : memref<1x128xf32, #tpu.memory_space<vmem>>, vector<1x128xf32>
    %2 = vector.broadcast %1 : vector<1x128xf32> to vector<128x128xf32>
    %3 = arith.mulf %0, %2 : vector<128x128xf32>
    %c0_3 = arith.constant 0 : index
    %c0_4 = arith.constant 0 : index
    %4 = vector.load %arg3[%c0_3, %c0_4] : memref<1x128xf32, #tpu.memory_space<vmem>>, vector<1x128xf32>
    %5 = vector.broadcast %4 : vector<1x128xf32> to vector<128x128xf32>
    %6 = arith.addf %3, %5 : vector<128x128xf32>
    %cst = arith.constant 0.000000e+00 : f32
    %7 = vector.broadcast %cst : f32 to vector<128x128xf32>
    %8 = arith.maximumf %6, %7 : vector<128x128xf32>
    %c0_5 = arith.constant 0 : index
    %c0_6 = arith.constant 0 : index
    %9 = vector.load %arg4[%c0_5, %c0_6] : memref<128x128xf32, #tpu.memory_space<vmem>>, vector<128x128xf32>
    tpu.vector_store %arg4[%c0_5, %c0_6], %8 {strides = array<i32>} : memref<128x128xf32, #tpu.memory_space<vmem>>, vector<128x128xf32>,
    return
  }
  func.func @transform_0(%arg0: i32) -> (i32, i32) {
    %c0_i32 = arith.constant 0 : i32
    %c0_i32_0 = arith.constant 0 : i32
    return %arg0, %c0_i32 : i32, i32
  }
  func.func @transform_1(%arg0: i32) -> (i32, i32) {
    %c0_i32 = arith.constant 0 : i32
    %c0_i32_0 = arith.constant 0 : i32
    %c0_i32_1 = arith.constant 0 : i32
    return %c0_i32, %c0_i32_0 : i32, i32
  }
  func.func @transform_2(%arg0: i32) -> (i32, i32) {
    %c0_i32 = arith.constant 0 : i32
    %c0_i32_0 = arith.constant 0 : i32
    %c0_i32_1 = arith.constant 0 : i32
    return %c0_i32, %c0_i32_0 : i32, i32
  }
  func.func @transform_3(%arg0: i32) -> (i32, i32) {
    %c0_i32 = arith.constant 0 : i32
    %c0_i32_0 = arith.constant 0 : i32
    return %arg0, %c0_i32 : i32, i32
  }
}

module attributes {stable_mosaic.version = 11 : i64} {
  func.func @_conv_taps_kernel(%arg0: i32, %arg1: memref<1x10x10x128xf32, #tpu.memory_space<vmem>>, %arg2: memref<9x128x128xbf16, #tpu.memory_space<vmem>>, %arg3: memref<1x8x8x128xf32, #tpu.memory_space<vmem>>, %arg4: memref<1x2x128xf32, #tpu.memory_space<vmem>>) attributes {dimension_semantics = [#tpu.dimension_semantics<parallel>], iteration_bounds = array<i64: 2>, scalar_prefetch = 0 : i64, scratch_operands = 0 : i64, tpu.core_type = #tpu.core_type<tc>, window_params = [{transform_indices = @transform_0, window_bounds = array<i64: 1, 10, 10, 128>}, {pipeline_mode = #tpu.pipeline_mode<synchronous>, transform_indices = @transform_1, window_bounds = array<i64: 9, 128, 128>}, {transform_indices = @transform_2, window_bounds = array<i64: 1, 8, 8, 128>}, {transform_indices = @transform_3, window_bounds = array<i64: 1, 2, 128>}]} {
    %cst = arith.constant 0.000000e+00 : f32
    %0 = vector.broadcast %cst : f32 to vector<64x128xf32>
    %c0 = arith.constant 0 : index
    %c0_0 = arith.constant 0 : index
    %c0_1 = arith.constant 0 : index
    %c0_2 = arith.constant 0 : index
    %1 = vector.load %arg1[%c0, %c0_0, %c0_1, %c0_2] : memref<1x10x10x128xf32, #tpu.memory_space<vmem>>, vector<1x8x8x128xf32>
    %2 = vector.shape_cast %1 : vector<1x8x8x128xf32> to vector<8x8x128xf32>
    %3 = vector.shape_cast %2 : vector<8x8x128xf32> to vector<64x128xf32>
    %4 = arith.truncf %3 : vector<64x128xf32> to vector<64x128xbf16>
    %c0_3 = arith.constant 0 : index
    %c0_4 = arith.constant 0 : index
    %c0_5 = arith.constant 0 : index
    %5 = vector.load %arg2[%c0_3, %c0_4, %c0_5] : memref<9x128x128xbf16, #tpu.memory_space<vmem>>, vector<1x128x128xbf16>
    %6 = vector.shape_cast %5 : vector<1x128x128xbf16> to vector<128x128xbf16>
    %cst_6 = arith.constant dense<0.000000e+00> : vector<64x128xf32>
    %7 = tpu.matmul %4, %6, %cst_6 {dimension_numbers = #tpu.dot_dimension_numbers<[1], [0], [0], [1], [0, 0, 1, 1], [], []>} : vector<64x128xbf16>, vector<128x128xbf16>, vector<64x128xf32> -> vector<64x128xf32>
    %8 = arith.addf %0, %7 : vector<64x128xf32>
    %c0_7 = arith.constant 0 : index
    %c0_8 = arith.constant 0 : index
    %c1 = arith.constant 1 : index
    %c0_9 = arith.constant 0 : index
    %9 = vector.load %arg1[%c0_7, %c0_8, %c1, %c0_9] : memref<1x10x10x128xf32, #tpu.memory_space<vmem>>, vector<1x8x8x128xf32>
    %10 = vector.shape_cast %9 : vector<1x8x8x128xf32> to vector<8x8x128xf32>
    %11 = vector.shape_cast %10 : vector<8x8x128xf32> to vector<64x128xf32>
    %12 = arith.truncf %11 : vector<64x128xf32> to vector<64x128xbf16>
    %c1_10 = arith.constant 1 : index
    %c0_11 = arith.constant 0 : index
    %c0_12 = arith.constant 0 : index
    %13 = vector.load %arg2[%c1_10, %c0_11, %c0_12] : memref<9x128x128xbf16, #tpu.memory_space<vmem>>, vector<1x128x128xbf16>
    %14 = vector.shape_cast %13 : vector<1x128x128xbf16> to vector<128x128xbf16>
    %cst_13 = arith.constant dense<0.000000e+00> : vector<64x128xf32>
    %15 = tpu.matmul %12, %14, %cst_13 {dimension_numbers = #tpu.dot_dimension_numbers<[1], [0], [0], [1], [0, 0, 1, 1], [], []>} : vector<64x128xbf16>, vector<128x128xbf16>, vector<64x128xf32> -> vector<64x128xf32>
    %16 = arith.addf %8, %15 : vector<64x128xf32>
    %c0_14 = arith.constant 0 : index
    %c0_15 = arith.constant 0 : index
    %c2 = arith.constant 2 : index
    %c0_16 = arith.constant 0 : index
    %17 = vector.load %arg1[%c0_14, %c0_15, %c2, %c0_16] : memref<1x10x10x128xf32, #tpu.memory_space<vmem>>, vector<1x8x8x128xf32>
    %18 = vector.shape_cast %17 : vector<1x8x8x128xf32> to vector<8x8x128xf32>
    %19 = vector.shape_cast %18 : vector<8x8x128xf32> to vector<64x128xf32>
    %20 = arith.truncf %19 : vector<64x128xf32> to vector<64x128xbf16>
    %c2_17 = arith.constant 2 : index
    %c0_18 = arith.constant 0 : index
    %c0_19 = arith.constant 0 : index
    %21 = vector.load %arg2[%c2_17, %c0_18, %c0_19] : memref<9x128x128xbf16, #tpu.memory_space<vmem>>, vector<1x128x128xbf16>
    %22 = vector.shape_cast %21 : vector<1x128x128xbf16> to vector<128x128xbf16>
    %cst_20 = arith.constant dense<0.000000e+00> : vector<64x128xf32>
    %23 = tpu.matmul %20, %22, %cst_20 {dimension_numbers = #tpu.dot_dimension_numbers<[1], [0], [0], [1], [0, 0, 1, 1], [], []>} : vector<64x128xbf16>, vector<128x128xbf16>, vector<64x128xf32> -> vector<64x128xf32>
    %24 = arith.addf %16, %23 : vector<64x128xf32>
    %c0_21 = arith.constant 0 : index
    %c1_22 = arith.constant 1 : index
    %c0_23 = arith.constant 0 : index
    %c0_24 = arith.constant 0 : index
    %25 = vector.load %arg1[%c0_21, %c1_22, %c0_23, %c0_24] : memref<1x10x10x128xf32, #tpu.memory_space<vmem>>, vector<1x8x8x128xf32>
    %26 = vector.shape_cast %25 : vector<1x8x8x128xf32> to vector<8x8x128xf32>
    %27 = vector.shape_cast %26 : vector<8x8x128xf32> to vector<64x128xf32>
    %28 = arith.truncf %27 : vector<64x128xf32> to vector<64x128xbf16>
    %c3 = arith.constant 3 : index
    %c0_25 = arith.constant 0 : index
    %c0_26 = arith.constant 0 : index
    %29 = vector.load %arg2[%c3, %c0_25, %c0_26] : memref<9x128x128xbf16, #tpu.memory_space<vmem>>, vector<1x128x128xbf16>
    %30 = vector.shape_cast %29 : vector<1x128x128xbf16> to vector<128x128xbf16>
    %cst_27 = arith.constant dense<0.000000e+00> : vector<64x128xf32>
    %31 = tpu.matmul %28, %30, %cst_27 {dimension_numbers = #tpu.dot_dimension_numbers<[1], [0], [0], [1], [0, 0, 1, 1], [], []>} : vector<64x128xbf16>, vector<128x128xbf16>, vector<64x128xf32> -> vector<64x128xf32>
    %32 = arith.addf %24, %31 : vector<64x128xf32>
    %c0_28 = arith.constant 0 : index
    %c1_29 = arith.constant 1 : index
    %c1_30 = arith.constant 1 : index
    %c0_31 = arith.constant 0 : index
    %33 = vector.load %arg1[%c0_28, %c1_29, %c1_30, %c0_31] : memref<1x10x10x128xf32, #tpu.memory_space<vmem>>, vector<1x8x8x128xf32>
    %34 = vector.shape_cast %33 : vector<1x8x8x128xf32> to vector<8x8x128xf32>
    %35 = vector.shape_cast %34 : vector<8x8x128xf32> to vector<64x128xf32>
    %36 = arith.truncf %35 : vector<64x128xf32> to vector<64x128xbf16>
    %c4 = arith.constant 4 : index
    %c0_32 = arith.constant 0 : index
    %c0_33 = arith.constant 0 : index
    %37 = vector.load %arg2[%c4, %c0_32, %c0_33] : memref<9x128x128xbf16, #tpu.memory_space<vmem>>, vector<1x128x128xbf16>
    %38 = vector.shape_cast %37 : vector<1x128x128xbf16> to vector<128x128xbf16>
    %cst_34 = arith.constant dense<0.000000e+00> : vector<64x128xf32>
    %39 = tpu.matmul %36, %38, %cst_34 {dimension_numbers = #tpu.dot_dimension_numbers<[1], [0], [0], [1], [0, 0, 1, 1], [], []>} : vector<64x128xbf16>, vector<128x128xbf16>, vector<64x128xf32> -> vector<64x128xf32>
    %40 = arith.addf %32, %39 : vector<64x128xf32>
    %c0_35 = arith.constant 0 : index
    %c1_36 = arith.constant 1 : index
    %c2_37 = arith.constant 2 : index
    %c0_38 = arith.constant 0 : index
    %41 = vector.load %arg1[%c0_35, %c1_36, %c2_37, %c0_38] : memref<1x10x10x128xf32, #tpu.memory_space<vmem>>, vector<1x8x8x128xf32>
    %42 = vector.shape_cast %41 : vector<1x8x8x128xf32> to vector<8x8x128xf32>
    %43 = vector.shape_cast %42 : vector<8x8x128xf32> to vector<64x128xf32>
    %44 = arith.truncf %43 : vector<64x128xf32> to vector<64x128xbf16>
    %c5 = arith.constant 5 : index
    %c0_39 = arith.constant 0 : index
    %c0_40 = arith.constant 0 : index
    %45 = vector.load %arg2[%c5, %c0_39, %c0_40] : memref<9x128x128xbf16, #tpu.memory_space<vmem>>, vector<1x128x128xbf16>
    %46 = vector.shape_cast %45 : vector<1x128x128xbf16> to vector<128x128xbf16>
    %cst_41 = arith.constant dense<0.000000e+00> : vector<64x128xf32>
    %47 = tpu.matmul %44, %46, %cst_41 {dimension_numbers = #tpu.dot_dimension_numbers<[1], [0], [0], [1], [0, 0, 1, 1], [], []>} : vector<64x128xbf16>, vector<128x128xbf16>, vector<64x128xf32> -> vector<64x128xf32>
    %48 = arith.addf %40, %47 : vector<64x128xf32>
    %c0_42 = arith.constant 0 : index
    %c2_43 = arith.constant 2 : index
    %c0_44 = arith.constant 0 : index
    %c0_45 = arith.constant 0 : index
    %49 = vector.load %arg1[%c0_42, %c2_43, %c0_44, %c0_45] : memref<1x10x10x128xf32, #tpu.memory_space<vmem>>, vector<1x8x8x128xf32>
    %50 = vector.shape_cast %49 : vector<1x8x8x128xf32> to vector<8x8x128xf32>
    %51 = vector.shape_cast %50 : vector<8x8x128xf32> to vector<64x128xf32>
    %52 = arith.truncf %51 : vector<64x128xf32> to vector<64x128xbf16>
    %c6 = arith.constant 6 : index
    %c0_46 = arith.constant 0 : index
    %c0_47 = arith.constant 0 : index
    %53 = vector.load %arg2[%c6, %c0_46, %c0_47] : memref<9x128x128xbf16, #tpu.memory_space<vmem>>, vector<1x128x128xbf16>
    %54 = vector.shape_cast %53 : vector<1x128x128xbf16> to vector<128x128xbf16>
    %cst_48 = arith.constant dense<0.000000e+00> : vector<64x128xf32>
    %55 = tpu.matmul %52, %54, %cst_48 {dimension_numbers = #tpu.dot_dimension_numbers<[1], [0], [0], [1], [0, 0, 1, 1], [], []>} : vector<64x128xbf16>, vector<128x128xbf16>, vector<64x128xf32> -> vector<64x128xf32>
    %56 = arith.addf %48, %55 : vector<64x128xf32>
    %c0_49 = arith.constant 0 : index
    %c2_50 = arith.constant 2 : index
    %c1_51 = arith.constant 1 : index
    %c0_52 = arith.constant 0 : index
    %57 = vector.load %arg1[%c0_49, %c2_50, %c1_51, %c0_52] : memref<1x10x10x128xf32, #tpu.memory_space<vmem>>, vector<1x8x8x128xf32>
    %58 = vector.shape_cast %57 : vector<1x8x8x128xf32> to vector<8x8x128xf32>
    %59 = vector.shape_cast %58 : vector<8x8x128xf32> to vector<64x128xf32>
    %60 = arith.truncf %59 : vector<64x128xf32> to vector<64x128xbf16>
    %c7 = arith.constant 7 : index
    %c0_53 = arith.constant 0 : index
    %c0_54 = arith.constant 0 : index
    %61 = vector.load %arg2[%c7, %c0_53, %c0_54] : memref<9x128x128xbf16, #tpu.memory_space<vmem>>, vector<1x128x128xbf16>
    %62 = vector.shape_cast %61 : vector<1x128x128xbf16> to vector<128x128xbf16>
    %cst_55 = arith.constant dense<0.000000e+00> : vector<64x128xf32>
    %63 = tpu.matmul %60, %62, %cst_55 {dimension_numbers = #tpu.dot_dimension_numbers<[1], [0], [0], [1], [0, 0, 1, 1], [], []>} : vector<64x128xbf16>, vector<128x128xbf16>, vector<64x128xf32> -> vector<64x128xf32>
    %64 = arith.addf %56, %63 : vector<64x128xf32>
    %c0_56 = arith.constant 0 : index
    %c2_57 = arith.constant 2 : index
    %c2_58 = arith.constant 2 : index
    %c0_59 = arith.constant 0 : index
    %65 = vector.load %arg1[%c0_56, %c2_57, %c2_58, %c0_59] : memref<1x10x10x128xf32, #tpu.memory_space<vmem>>, vector<1x8x8x128xf32>
    %66 = vector.shape_cast %65 : vector<1x8x8x128xf32> to vector<8x8x128xf32>
    %67 = vector.shape_cast %66 : vector<8x8x128xf32> to vector<64x128xf32>
    %68 = arith.truncf %67 : vector<64x128xf32> to vector<64x128xbf16>
    %c8 = arith.constant 8 : index
    %c0_60 = arith.constant 0 : index
    %c0_61 = arith.constant 0 : index
    %69 = vector.load %arg2[%c8, %c0_60, %c0_61] : memref<9x128x128xbf16, #tpu.memory_space<vmem>>, vector<1x128x128xbf16>
    %70 = vector.shape_cast %69 : vector<1x128x128xbf16> to vector<128x128xbf16>
    %cst_62 = arith.constant dense<0.000000e+00> : vector<64x128xf32>
    %71 = tpu.matmul %68, %70, %cst_62 {dimension_numbers = #tpu.dot_dimension_numbers<[1], [0], [0], [1], [0, 0, 1, 1], [], []>} : vector<64x128xbf16>, vector<128x128xbf16>, vector<64x128xf32> -> vector<64x128xf32>
    %72 = arith.addf %64, %71 : vector<64x128xf32>
    %73 = vector.shape_cast %72 : vector<64x128xf32> to vector<1x8x8x128xf32>
    %c0_63 = arith.constant 0 : index
    %c0_64 = arith.constant 0 : index
    %c0_65 = arith.constant 0 : index
    %c0_66 = arith.constant 0 : index
    %74 = vector.load %arg3[%c0_63, %c0_64, %c0_65, %c0_66] : memref<1x8x8x128xf32, #tpu.memory_space<vmem>>, vector<1x8x8x128xf32>
    tpu.vector_store %arg3[%c0_63, %c0_64, %c0_65, %c0_66], %73 {strides = array<i32>} : memref<1x8x8x128xf32, #tpu.memory_space<vmem>>, vector<1x8x8x128xf32>,
    %cst_67 = arith.constant dense<0.000000e+00> : vector<128xf32>
    %75 = vector.multi_reduction <add>, %72, %cst_67 [0] : vector<64x128xf32> to vector<128xf32>
    %76 = vector.shape_cast %75 : vector<128xf32> to vector<1x128xf32>
    %77 = arith.mulf %72, %72 : vector<64x128xf32>
    %cst_68 = arith.constant dense<0.000000e+00> : vector<128xf32>
    %78 = vector.multi_reduction <add>, %77, %cst_68 [0] : vector<64x128xf32> to vector<128xf32>
    %79 = vector.shape_cast %78 : vector<128xf32> to vector<1x128xf32>
    %80 = tpu.concatenate %76, %79 in 0 : vector<1x128xf32>, vector<1x128xf32> -> vector<2x128xf32>
    %81 = vector.shape_cast %80 : vector<2x128xf32> to vector<1x2x128xf32>
    %c0_69 = arith.constant 0 : index
    %c0_70 = arith.constant 0 : index
    %c0_71 = arith.constant 0 : index
    %82 = vector.load %arg4[%c0_69, %c0_70, %c0_71] : memref<1x2x128xf32, #tpu.memory_space<vmem>>, vector<1x2x128xf32>
    tpu.vector_store %arg4[%c0_69, %c0_70, %c0_71], %81 {strides = array<i32>} : memref<1x2x128xf32, #tpu.memory_space<vmem>>, vector<1x2x128xf32>,
    return
  }
  func.func @transform_0(%arg0: i32) -> (i32, i32, i32, i32) {
    %c0_i32 = arith.constant 0 : i32
    %c0_i32_0 = arith.constant 0 : i32
    %c0_i32_1 = arith.constant 0 : i32
    %c0_i32_2 = arith.constant 0 : i32
    return %arg0, %c0_i32, %c0_i32_0, %c0_i32_1 : i32, i32, i32, i32
  }
  func.func @transform_1(%arg0: i32) -> (i32, i32, i32) {
    %c0_i32 = arith.constant 0 : i32
    %c0_i32_0 = arith.constant 0 : i32
    %c0_i32_1 = arith.constant 0 : i32
    %c0_i32_2 = arith.constant 0 : i32
    return %c0_i32, %c0_i32_0, %c0_i32_1 : i32, i32, i32
  }
  func.func @transform_2(%arg0: i32) -> (i32, i32, i32, i32) {
    %c0_i32 = arith.constant 0 : i32
    %c0_i32_0 = arith.constant 0 : i32
    %c0_i32_1 = arith.constant 0 : i32
    %c0_i32_2 = arith.constant 0 : i32
    return %arg0, %c0_i32, %c0_i32_0, %c0_i32_1 : i32, i32, i32, i32
  }
  func.func @transform_3(%arg0: i32) -> (i32, i32, i32) {
    %c0_i32 = arith.constant 0 : i32
    %c0_i32_0 = arith.constant 0 : i32
    %c0_i32_1 = arith.constant 0 : i32
    return %arg0, %c0_i32, %c0_i32_0 : i32, i32, i32
  }
}

module attributes {stable_mosaic.version = 11 : i64} {
  func.func @_bn_add_act_kernel(%arg0: i32, %arg1: memref<128x128xf32, #tpu.memory_space<vmem>>, %arg2: memref<128x128xf32, #tpu.memory_space<vmem>>, %arg3: memref<1x128xf32, #tpu.memory_space<vmem>>, %arg4: memref<1x128xf32, #tpu.memory_space<vmem>>, %arg5: memref<1x128xf32, #tpu.memory_space<vmem>>, %arg6: memref<1x128xf32, #tpu.memory_space<vmem>>, %arg7: memref<128x128xf32, #tpu.memory_space<vmem>>) attributes {dimension_semantics = [#tpu.dimension_semantics<parallel>], iteration_bounds = array<i64: 1>, scalar_prefetch = 0 : i64, scratch_operands = 0 : i64, tpu.core_type = #tpu.core_type<tc>, window_params = [{transform_indices = @transform_0, window_bounds = array<i64: 128, 128>}, {transform_indices = @transform_1, window_bounds = array<i64: 128, 128>}, {pipeline_mode = #tpu.pipeline_mode<synchronous>, transform_indices = @transform_2, window_bounds = array<i64: 1, 128>}, {pipeline_mode = #tpu.pipeline_mode<synchronous>, transform_indices = @transform_3, window_bounds = array<i64: 1, 128>}, {pipeline_mode = #tpu.pipeline_mode<synchronous>, transform_indices = @transform_4, window_bounds = array<i64: 1, 128>}, {pipeline_mode = #tpu.pipeline_mode<synchronous>, transform_indices = @transform_5, window_bounds = array<i64: 1, 128>}, {transform_indices = @transform_6, window_bounds = array<i64: 128, 128>}]} {
    %c0 = arith.constant 0 : index
    %c0_0 = arith.constant 0 : index
    %0 = vector.load %arg1[%c0, %c0_0] : memref<128x128xf32, #tpu.memory_space<vmem>>, vector<128x128xf32>
    %c0_1 = arith.constant 0 : index
    %c0_2 = arith.constant 0 : index
    %1 = vector.load %arg3[%c0_1, %c0_2] : memref<1x128xf32, #tpu.memory_space<vmem>>, vector<1x128xf32>
    %2 = vector.broadcast %1 : vector<1x128xf32> to vector<128x128xf32>
    %3 = arith.mulf %0, %2 : vector<128x128xf32>
    %c0_3 = arith.constant 0 : index
    %c0_4 = arith.constant 0 : index
    %4 = vector.load %arg4[%c0_3, %c0_4] : memref<1x128xf32, #tpu.memory_space<vmem>>, vector<1x128xf32>
    %5 = vector.broadcast %4 : vector<1x128xf32> to vector<128x128xf32>
    %6 = arith.addf %3, %5 : vector<128x128xf32>
    %c0_5 = arith.constant 0 : index
    %c0_6 = arith.constant 0 : index
    %7 = vector.load %arg2[%c0_5, %c0_6] : memref<128x128xf32, #tpu.memory_space<vmem>>, vector<128x128xf32>
    %c0_7 = arith.constant 0 : index
    %c0_8 = arith.constant 0 : index
    %8 = vector.load %arg5[%c0_7, %c0_8] : memref<1x128xf32, #tpu.memory_space<vmem>>, vector<1x128xf32>
    %9 = vector.broadcast %8 : vector<1x128xf32> to vector<128x128xf32>
    %10 = arith.mulf %7, %9 : vector<128x128xf32>
    %11 = arith.addf %6, %10 : vector<128x128xf32>
    %c0_9 = arith.constant 0 : index
    %c0_10 = arith.constant 0 : index
    %12 = vector.load %arg6[%c0_9, %c0_10] : memref<1x128xf32, #tpu.memory_space<vmem>>, vector<1x128xf32>
    %13 = vector.broadcast %12 : vector<1x128xf32> to vector<128x128xf32>
    %14 = arith.addf %11, %13 : vector<128x128xf32>
    %cst = arith.constant 0.000000e+00 : f32
    %15 = vector.broadcast %cst : f32 to vector<128x128xf32>
    %16 = arith.maximumf %14, %15 : vector<128x128xf32>
    %c0_11 = arith.constant 0 : index
    %c0_12 = arith.constant 0 : index
    %17 = vector.load %arg7[%c0_11, %c0_12] : memref<128x128xf32, #tpu.memory_space<vmem>>, vector<128x128xf32>
    tpu.vector_store %arg7[%c0_11, %c0_12], %16 {strides = array<i32>} : memref<128x128xf32, #tpu.memory_space<vmem>>, vector<128x128xf32>,
    return
  }
  func.func @transform_0(%arg0: i32) -> (i32, i32) {
    %c0_i32 = arith.constant 0 : i32
    %c0_i32_0 = arith.constant 0 : i32
    return %arg0, %c0_i32 : i32, i32
  }
  func.func @transform_1(%arg0: i32) -> (i32, i32) {
    %c0_i32 = arith.constant 0 : i32
    %c0_i32_0 = arith.constant 0 : i32
    return %arg0, %c0_i32 : i32, i32
  }
  func.func @transform_2(%arg0: i32) -> (i32, i32) {
    %c0_i32 = arith.constant 0 : i32
    %c0_i32_0 = arith.constant 0 : i32
    %c0_i32_1 = arith.constant 0 : i32
    return %c0_i32, %c0_i32_0 : i32, i32
  }
  func.func @transform_3(%arg0: i32) -> (i32, i32) {
    %c0_i32 = arith.constant 0 : i32
    %c0_i32_0 = arith.constant 0 : i32
    %c0_i32_1 = arith.constant 0 : i32
    return %c0_i32, %c0_i32_0 : i32, i32
  }
  func.func @transform_4(%arg0: i32) -> (i32, i32) {
    %c0_i32 = arith.constant 0 : i32
    %c0_i32_0 = arith.constant 0 : i32
    %c0_i32_1 = arith.constant 0 : i32
    return %c0_i32, %c0_i32_0 : i32, i32
  }
  func.func @transform_5(%arg0: i32) -> (i32, i32) {
    %c0_i32 = arith.constant 0 : i32
    %c0_i32_0 = arith.constant 0 : i32
    %c0_i32_1 = arith.constant 0 : i32
    return %c0_i32, %c0_i32_0 : i32, i32
  }
  func.func @transform_6(%arg0: i32) -> (i32, i32) {
    %c0_i32 = arith.constant 0 : i32
    %c0_i32_0 = arith.constant 0 : i32
    return %arg0, %c0_i32 : i32, i32
  }
}

</mosaic_0001>

<bundles_post_ra>
// kernel: _lambda_.12
= control target key start
LH: loop header
LB: loop body
LE: loop exit
PB: predicated region body
PF: predicated region fallthrough
CT: control target
= control target key end

     0   :  { %s573_s12 = smov 0   ;;  %s635_s0 = inlined_call_operand.vmem [shape: f32[2,8,8,128], index: 0, kind: input, shape index: {}]   ;;  %s636_s1 = inlined_call_operand.vmem [shape: bf16[1,128,128], index: 1, kind: input, shape index: {}]   ;;  %s637_s2 = inlined_call_operand.vmem [shape: f32[2,8,8,128], index: 2, kind: output, shape index: {0}]   ;;  %s638_s3 = inlined_call_operand.vmem [shape: f32[2,2,128], index: 3, kind: output, shape index: {1}]  }
   0x1 LB: > { %s455_s13 = sadd.s32 4294967295, %s551_s12   ;;  %p459_p0 = scmp.ge.s32.totalorder %s551_s12, 1  ;;  %s551_s12 = sphi %s573_s12, %s14_s12  }
   0x2   : > { %p140_p1 = scmp.lt.s32.totalorder %s551_s12, 3 }
   0x4   : > { %p141_p2 = pnand %p459_p0, %p140_p1 }
   0x5   : > { %v537_v0 = vld [vmem:[%s636_s1] sm:$0xff] (!%p141_p2)   ;;  %p168_p3 = scmp.lt.s32.totalorder (!%p141_p2), %s455_s13, 1  ;;  %v538_v1 = vld [vmem:[%s636_s1 + $0x8] sm:$0xff] (!%p141_p2)   ;;  %v539_v2 = vld [vmem:[%s636_s1 + $0x10] sm:$0xff] (!%p141_p2)   ;;  %vm366_vm0 = vcmask (!%p141_p2), 1040384  }
   0x6   : > { %144 = sbr.rel (%p141_p2) target bundleno = 283 (0x11b), region = 28  ;;  %489 = vmatprep.subr.bf16.mxu0 (!%p141_p2), %v537_v0  ;;  %513 = vmatprep.subr.bf16.mxu1 (!%p141_p2), %v537_v0  ;;  %v540_v3 = vld [vmem:[%s636_s1 + $0x18] sm:$0xff] (!%p141_p2)   ;;  %v541_v10 = vld [vmem:[%s636_s1 + $0x20] sm:$0xff] (!%p141_p2)   ;;  %v542_v11 = vld [vmem:[%s636_s1 + $0x28] sm:$0xff] (!%p141_p2)  }
   0x7   : > { %490 = vmatpush3.bf16.msra.mxu0 (!%p141_p2), %v537_v0  ;;  %521 = vmatpush3.bf16.msra.mxu1 (!%p141_p2), %v537_v0  ;;  %v543_v12 = vld [vmem:[%s636_s1 + $0x30] sm:$0xff] (!%p141_p2)   ;;  %v544_v13 = vld [vmem:[%s636_s1 + $0x38] sm:$0xff] (!%p141_p2)  }
   0x8   : > { %491 = vmatprep.subr.bf16.mxu0 (!%p141_p2), %v538_v1  ;;  %514 = vmatprep.subr.bf16.mxu1 (!%p141_p2), %v538_v1 }
   0xb   : > { %492 = vmatpush3.bf16.msra.mxu0 (!%p141_p2), %v538_v1  ;;  %522 = vmatpush3.bf16.msra.mxu1 (!%p141_p2), %v538_v1 }
   0xc   : > { %493 = vmatprep.subr.bf16.mxu0 (!%p141_p2), %v539_v2  ;;  %515 = vmatprep.subr.bf16.mxu1 (!%p141_p2), %v539_v2 }
   0xd   : > { %s640_s13 = smov (!%p168_p3, %s455_s13), 1 }
   0xe   : > { %s475_s20 = sshll.u32 %s640_s13, 6  ;;  %s464_s10 = sshll.u32 %s640_s13, 1 }
   0xf   : > { %s598_s23 = scalar_lea.vmem %s635_s0, %s475_s20  ;;  %494 = vmatpush3.bf16.msra.mxu0 %v539_v2  ;;  %523 = vmatpush3.bf16.msra.mxu1 %v539_v2  ;;  %s177_s9 = scalar_lea.vmem %s637_s2, %s475_s20 }
  0x10   : > { %v183_v4 = vld [vmem:[%s598_s23] sm:$0xff]  ;;  %v184_v5 = vld [vmem:[%s598_s23 + $0x8] sm:$0xff]  ;;  %495 = vmatprep.subr.bf16.mxu0 %v540_v3  ;;  %516 = vmatprep.subr.bf16.mxu1 %v540_v3  ;;  %v185_v14 = vld [vmem:[%s598_s23 + $0x10] sm:$0xff]  ;;  %s181_s15 = scalar_lea.vmem %s638_s3, %s464_s10 }
  0x11   : > { %v191_v6 = vpack.c.bf16 %v184_v5, %v183_v4  ;;  %v187_v7 = vld [vmem:[%s598_s23 + $0x20] sm:$0xff]  ;;  %v188_v8 = vld [vmem:[%s598_s23 + $0x28] sm:$0xff]  ;;  %v186_v15 = vld [vmem:[%s598_s23 + $0x18] sm:$0xff] }
  0x12   : > { %v193_v9 = vpack.c.bf16 %v188_v8, %v187_v7  ;;  %v189_v16 = vld [vmem:[%s598_s23 + $0x30] sm:$0xff]  ;;  %v190_v17 = vld [vmem:[%s598_s23 + $0x38] sm:$0xff]  ;;  %v192_v18 = vpack.c.bf16 %v186_v15, %v185_v14 }
  0x13   : > { %505 = vmatprep.mubr.bf16.mxu0 %v191_v6  ;;  %496 = vmatpush3.bf16.msra.mxu0 %v540_v3  ;;  %v194_v19 = vpack.c.bf16 %v190_v17, %v189_v16 }
  0x14   : > { %509 = vmatprep.mubr.bf16.mxu1 %v193_v9  ;;  %524 = vmatpush3.bf16.msra.mxu1 %v540_v3 }
  0x15   : > { %497 = vmatprep.subr.bf16.mxu0 %v541_v10  ;;  %517 = vmatprep.subr.bf16.mxu1 %v541_v10 }
  0x17   : > { %498 = vmatpush3.bf16.msra.mxu0 %v541_v10 }
  0x18   : > { %525 = vmatpush3.bf16.msra.mxu1 %v541_v10  ;;  %499 = vmatprep.subr.bf16.mxu0 %v542_v11 }
  0x19   : > { %518 = vmatprep.subr.bf16.mxu1 %v542_v11 }
  0x1b   : > { %500 = vmatpush3.bf16.msra.mxu0 %v542_v11 }
  0x1c   : > { %526 = vmatpush3.bf16.msra.mxu1 %v542_v11  ;;  %501 = vmatprep.subr.bf16.mxu0 %v543_v12 }
  0x1d   : > { %519 = vmatprep.subr.bf16.mxu1 %v543_v12 }
  0x1f   : > { %502 = vmatpush3.bf16.msra.mxu0 %v543_v12 }
  0x20   : > { %527 = vmatpush3.bf16.msra.mxu1 %v543_v12  ;;  %503 = vmatprep.subr.bf16.mxu0 %v544_v13 }
  0x21   : > { %520 = vmatprep.subr.bf16.mxu1 %v544_v13 }
  0x23   : > { %504 = vmatpush3.bf16.msra.mxu0 %v544_v13 }
  0x24   : > { %528 = vmatpush3.bf16.msra.mxu1 %v544_v13 }
  0x26   : > { %506 = vmatmul.mubr.bf16.vlgmr.msra.gmra.mrb[0].mxu0 %v192_v18 }
  0x27   : > { %510 = vmatmul.mubr.bf16.vlgmr.msra.gmra.mrb[0].mxu1 %v194_v19 }
  0xf9   : > { %v507_v20 = vpop.f32.mrb[0].mxu0 }
  0xfa   : > { %v511_v21 = vpop.f32.mrb[0].mxu1  ;;  %326 = vst [vmem:[%s177_s9 + $0x10] sm:$0xff] %v507_v20  ;;  %v293_v22 = vpop.f32.mrb[1].mxu0  ;;  %v347_v31 = vmul.f32 %v507_v20, %v507_v20 }
  0xfb   : > { %330 = vst [vmem:[%s177_s9 + $0x30] sm:$0xff] %v511_v21  ;;  %v309_v23 = vpop.f32.mrb[1].mxu1  ;;  %324 = vst [vmem:[%s177_s9] sm:$0xff] %v293_v22  ;;  %v508_v24 = vpop.f32.mrb[2].mxu0  ;;  %v345_v28 = vmul.f32 %v293_v22, %v293_v22  ;;  %v351_v43 = vmul.f32 %v511_v21, %v511_v21 }
  0xfc   : > { %328 = vst [vmem:[%s177_s9 + $0x20] sm:$0xff] %v309_v23  ;;  %v512_v25 = vpop.f32.mrb[2].mxu1  ;;  %327 = vst [vmem:[%s177_s9 + $0x18] sm:$0xff] %v508_v24  ;;  %v296_v26 = vpop.f32.mrb[3].mxu0  ;;  %v348_v34 = vmul.f32 %v508_v24, %v508_v24  ;;  %v349_v37 = vmul.f32 %v309_v23, %v309_v23 }
  0xfd   : > { %331 = vst [vmem:[%s177_s9 + $0x38] sm:$0xff] %v512_v25  ;;  %v312_v27 = vpop.f32.mrb[3].mxu1  ;;  %325 = vst [vmem:[%s177_s9 + $0x8] sm:$0xff] %v296_v26  ;;  %v332_v29 = vadd.f32 %v296_v26, %v293_v22  ;;  %v346_v30 = vmul.f32 %v296_v26, %v296_v26  ;;  %v352_v46 = vmul.f32 %v512_v25, %v512_v25 }
  0xfe   : > { %329 = vst [vmem:[%s177_s9 + $0x28] sm:$0xff] %v312_v27  ;;  %v350_v42 = vmul.f32 %v312_v27, %v312_v27 }
  0xff   : > { %v333_v32 = vadd.f32 %v507_v20, %v332_v29  ;;  %v353_v33 = vadd.f32 %v346_v30, %v345_v28 }
 0x101   : > { %v354_v35 = vadd.f32 %v353_v33, %v347_v31  ;;  %v334_v36 = vadd.f32 %v508_v24, %v333_v32 }
 0x103   : > { %v335_v38 = vadd.f32 %v334_v36, %v309_v23  ;;  %v355_v39 = vadd.f32 %v354_v35, %v348_v34 }
 0x105   : > { %v356_v40 = vadd.f32 %v355_v39, %v349_v37  ;;  %v336_v41 = vadd.f32 %v335_v38, %v312_v27 }
 0x107   : > { %v337_v44 = vadd.f32 %v511_v21, %v336_v41  ;;  %v357_v45 = vadd.f32 %v356_v40, %v350_v42 }
 0x109   : > { %v338_v47 = vadd.f32 %v512_v25, %v337_v44  ;;  %v358_v48 = vadd.f32 %v357_v45, %v351_v43 }
 0x10b   : > { %v339_v49 = vrot.slane %v338_v47, 4  ;;  %v359_v50 = vadd.f32 %v358_v48, %v352_v46 }
 0x10d   : > { %v340_v51 = vadd.f32 %v339_v49, %v338_v47  ;;  %v360_v52 = vrot.slane %v359_v50, 4 }
 0x10f   : > { %v341_v53 = vrot.slane %v340_v51, 2  ;;  %v361_v54 = vadd.f32 %v360_v52, %v359_v50 }
 0x111   : > { %v342_v55 = vadd.f32 %v341_v53, %v340_v51  ;;  %v362_v56 = vrot.slane %v361_v54, 2 }
 0x113   : > { %v343_v57 = vrot.slane %v342_v55, 1  ;;  %v363_v58 = vadd.f32 %v362_v56, %v361_v54 }
 0x115   : > { %v364_v59 = vrot.slane %v363_v58, 1  ;;  %v344_v60 = vadd.f32 %v343_v57, %v342_v55 }
 0x117   : > { %v365_v61 = vadd.f32 %v364_v59, %v363_v58 }
 0x119   : > { %v367_v62 = vsel %vm366_vm0, %v344_v60, %v365_v61 }
 0x11a   : > { %368 = vst [vmem:[%s181_s15] sm:$0x3] %v367_v62 }
 0x11b PF: > { %s14_s12 = sadd.s32 1, %s551_s12  }
 0x11c   : > { %p11_p4 = scmp.ge.s32.totalorder %s14_s12, 4  }
 0x11e   :  { %13 = sbr.rel (!%p11_p4) target bundleno = 1 (0x1), region = 70 }

// kernel: _lambda_.10
= control target key start
LH: loop header
LB: loop body
LE: loop exit
PB: predicated region body
PF: predicated region fallthrough
CT: control target
= control target key end

     0   :  { %s254_s0 = inlined_call_operand.vmem [shape: f32[128,128], index: 0, kind: input, shape index: {}]   ;;  %s255_s1 = inlined_call_operand.vmem [shape: f32[1,128], index: 1, kind: input, shape index: {}]   ;;  %s256_s2 = inlined_call_operand.vmem [shape: f32[1,128], index: 2, kind: input, shape index: {}]   ;;  %s257_s3 = inlined_call_operand.vmem [shape: f32[128,128], index: 3, kind: output, shape index: {}]  }
   0x1   :  { %v14_v0 = vld [vmem:[%s254_s0] sm:$0xff]  ;;  %v15_v4 = vld [vmem:[%s254_s0 + $0x8] sm:$0xff]  ;;  %v16_v5 = vld [vmem:[%s254_s0 + $0x10] sm:$0xff] }
   0x2   :  { %v112_v1 = vld [vmem:[%s255_s1] ss:$0 sm:$0xff]  ;;  %v17_v6 = vld [vmem:[%s254_s0 + $0x18] sm:$0xff]  ;;  %v19_v11 = vld [vmem:[%s254_s0 + $0x28] sm:$0xff] }
   0x3   :  { %v143_v2 = vld [vmem:[%s256_s2] ss:$0 sm:$0xff]  ;;  %v37_v3 = vmul.f32 %v112_v1, %v14_v0  ;;  %v38_v7 = vmul.f32 %v112_v1, %v15_v4  ;;  %v39_v8 = vmul.f32 %v112_v1, %v16_v5  ;;  %v40_v9 = vmul.f32 %v112_v1, %v17_v6  ;;  %v20_v12 = vld [vmem:[%s254_s0 + $0x30] sm:$0xff]  ;;  %v21_v17 = vld [vmem:[%s254_s0 + $0x38] sm:$0xff] }
   0x4   :  { %v18_v10 = vld [vmem:[%s254_s0 + $0x20] sm:$0xff]  ;;  %v42_v15 = vmul.f32 %v112_v1, %v19_v11  ;;  %v43_v16 = vmul.f32 %v112_v1, %v20_v12  ;;  %v44_v21 = vmul.f32 %v112_v1, %v21_v17  ;;  %v23_v27 = vld [vmem:[%s254_s0 + $0x48] sm:$0xff]  ;;  %v24_v28 = vld [vmem:[%s254_s0 + $0x50] sm:$0xff] }
   0x5   :  { %v60_v13 = vadd.f32 %v143_v2, %v37_v3  ;;  %v41_v14 = vmul.f32 %v112_v1, %v18_v10  ;;  %v61_v18 = vadd.f32 %v143_v2, %v38_v7  ;;  %v62_v19 = vadd.f32 %v143_v2, %v39_v8  ;;  %v22_v22 = vld [vmem:[%s254_s0 + $0x40] sm:$0xff]  ;;  %v25_v29 = vld [vmem:[%s254_s0 + $0x58] sm:$0xff]  ;;  %v27_v35 = vld [vmem:[%s254_s0 + $0x68] sm:$0xff] }
   0x6   :  { %v63_v20 = vadd.f32 %v143_v2, %v40_v9  ;;  %v65_v25 = vadd.f32 %v143_v2, %v42_v15  ;;  %v66_v26 = vadd.f32 %v143_v2, %v43_v16  ;;  %v67_v33 = vadd.f32 %v143_v2, %v44_v21  ;;  %v26_v34 = vld [vmem:[%s254_s0 + $0x60] sm:$0xff]  ;;  %v28_v36 = vld [vmem:[%s254_s0 + $0x70] sm:$0xff]  ;;  %v29_v41 = vld [vmem:[%s254_s0 + $0x78] sm:$0xff] }
   0x7   :  { %v76_v23 = vmax.f32 %v60_v13, 0.0  ;;  %v64_v24 = vadd.f32 %v143_v2, %v41_v14  ;;  %v77_v30 = vmax.f32 %v61_v18, 0.0  ;;  %v78_v31 = vmax.f32 %v62_v19, 0.0 }
   0x8   :  { %v79_v32 = vmax.f32 %v63_v20, 0.0  ;;  %v81_v38 = vmax.f32 %v65_v25, 0.0  ;;  %v82_v39 = vmax.f32 %v66_v26, 0.0  ;;  %v45_v40 = vmul.f32 %v112_v1, %v22_v22 }
   0x9   :  { %92 = vst [vmem:[%s257_s3] sm:$0xff] %v76_v23  ;;  %v80_v37 = vmax.f32 %v64_v24, 0.0  ;;  %93 = vst [vmem:[%s257_s3 + $0x8] sm:$0xff] %v77_v30  ;;  %v83_v42 = vmax.f32 %v67_v33, 0.0  ;;  %v46_v43 = vmul.f32 %v112_v1, %v23_v27  ;;  %v47_v44 = vmul.f32 %v112_v1, %v24_v28 }
   0xa   :  { %94 = vst [vmem:[%s257_s3 + $0x10] sm:$0xff] %v78_v31  ;;  %95 = vst [vmem:[%s257_s3 + $0x18] sm:$0xff] %v79_v32  ;;  %v48_v45 = vmul.f32 %v112_v1, %v25_v29  ;;  %v68_v46 = vadd.f32 %v143_v2, %v45_v40  ;;  %v49_v47 = vmul.f32 %v112_v1, %v26_v34 }
   0xb   :  { %96 = vst [vmem:[%s257_s3 + $0x20] sm:$0xff] %v80_v37  ;;  %97 = vst [vmem:[%s257_s3 + $0x28] sm:$0xff] %v81_v38  ;;  %v50_v48 = vmul.f32 %v112_v1, %v27_v35  ;;  %v51_v49 = vmul.f32 %v112_v1, %v28_v36  ;;  %v69_v50 = vadd.f32 %v143_v2, %v46_v43 }
   0xc   :  { %98 = vst [vmem:[%s257_s3 + $0x30] sm:$0xff] %v82_v39  ;;  %99 = vst [vmem:[%s257_s3 + $0x38] sm:$0xff] %v83_v42  ;;  %v70_v51 = vadd.f32 %v143_v2, %v47_v44  ;;  %v71_v52 = vadd.f32 %v143_v2, %v48_v45  ;;  %v52_v53 = vmul.f32 %v112_v1, %v29_v41  ;;  %v84_v54 = vmax.f32 %v68_v46, 0.0 }
   0xd   :  { %v72_v55 = vadd.f32 %v143_v2, %v49_v47  ;;  %v73_v56 = vadd.f32 %v143_v2, %v50_v48  ;;  %v74_v57 = vadd.f32 %v143_v2, %v51_v49  ;;  %v85_v58 = vmax.f32 %v69_v50, 0.0 }
   0xe   :  { %v86_v59 = vmax.f32 %v70_v51, 0.0  ;;  %v87_v60 = vmax.f32 %v71_v52, 0.0  ;;  %v75_v61 = vadd.f32 %v143_v2, %v52_v53  ;;  %100 = vst [vmem:[%s257_s3 + $0x40] sm:$0xff] %v84_v54 }
   0xf   :  { %v88_v62 = vmax.f32 %v72_v55, 0.0  ;;  %v89_v63 = vmax.f32 %v73_v56, 0.0  ;;  %v90_v0 = vmax.f32 %v74_v57, 0.0  ;;  %101 = vst [vmem:[%s257_s3 + $0x48] sm:$0xff] %v85_v58 }
  0x10   :  { %102 = vst [vmem:[%s257_s3 + $0x50] sm:$0xff] %v86_v59  ;;  %103 = vst [vmem:[%s257_s3 + $0x58] sm:$0xff] %v87_v60  ;;  %v91_v1 = vmax.f32 %v75_v61, 0.0 }
  0x11   :  { %104 = vst [vmem:[%s257_s3 + $0x60] sm:$0xff] %v88_v62  ;;  %105 = vst [vmem:[%s257_s3 + $0x68] sm:$0xff] %v89_v63 }
  0x12   :  { %106 = vst [vmem:[%s257_s3 + $0x70] sm:$0xff] %v90_v0  ;;  %107 = vst [vmem:[%s257_s3 + $0x78] sm:$0xff] %v91_v1 }

// kernel: _lambda_.13
= control target key start
LH: loop header
LB: loop body
LE: loop exit
PB: predicated region body
PF: predicated region fallthrough
CT: control target
= control target key end

     0   :  { %s466_s0 = inlined_call_operand.vmem [shape: f32[128,128], index: 0, kind: input, shape index: {}]   ;;  %s467_s1 = inlined_call_operand.vmem [shape: f32[128,128], index: 1, kind: input, shape index: {}]   ;;  %s468_s2 = inlined_call_operand.vmem [shape: f32[1,128], index: 2, kind: input, shape index: {}]   ;;  %s469_s3 = inlined_call_operand.vmem [shape: f32[1,128], index: 3, kind: input, shape index: {}]   ;;  %s470_s4 = inlined_call_operand.vmem [shape: f32[1,128], index: 4, kind: input, shape index: {}]   ;;  %s471_s5 = inlined_call_operand.vmem [shape: f32[1,128], index: 5, kind: input, shape index: {}]   ;;  %s472_s6 = inlined_call_operand.vmem [shape: f32[128,128], index: 6, kind: output, shape index: {}]  }
   0x1   :  { %v23_v0 = vld [vmem:[%s466_s0] sm:$0xff]  ;;  %v24_v8 = vld [vmem:[%s466_s0 + $0x8] sm:$0xff]  ;;  %v25_v10 = vld [vmem:[%s466_s0 + $0x10] sm:$0xff] }
   0x2   :  { %v244_v1 = vld [vmem:[%s468_s2] ss:$0 sm:$0xff]  ;;  %v86_v9 = vld [vmem:[%s467_s1 + $0x8] sm:$0xff]  ;;  %v87_v15 = vld [vmem:[%s467_s1 + $0x10] sm:$0xff] }
   0x3   :  { %v249_v2 = vld [vmem:[%s469_s3] ss:$0 sm:$0xff]  ;;  %v46_v3 = vmul.f32 %v244_v1, %v23_v0  ;;  %v47_v12 = vmul.f32 %v244_v1, %v24_v8  ;;  %v48_v14 = vmul.f32 %v244_v1, %v25_v10  ;;  %v26_v16 = vld [vmem:[%s466_s0 + $0x18] sm:$0xff]  ;;  %v28_v23 = vld [vmem:[%s466_s0 + $0x28] sm:$0xff] }
   0x4   :  { %v85_v4 = vld [vmem:[%s467_s1] sm:$0xff]  ;;  %v88_v17 = vld [vmem:[%s467_s1 + $0x18] sm:$0xff]  ;;  %v49_v19 = vmul.f32 %v244_v1, %v26_v16  ;;  %v90_v28 = vld [vmem:[%s467_s1 + $0x28] sm:$0xff]  ;;  %v51_v33 = vmul.f32 %v244_v1, %v28_v23 }
   0x5   :  { %v258_v5 = vld [vmem:[%s470_s4] ss:$0 sm:$0xff]  ;;  %v69_v11 = vadd.f32 %v249_v2, %v46_v3  ;;  %v70_v25 = vadd.f32 %v249_v2, %v47_v12  ;;  %v71_v26 = vadd.f32 %v249_v2, %v48_v14  ;;  %v29_v29 = vld [vmem:[%s466_s0 + $0x30] sm:$0xff]  ;;  %v30_v39 = vld [vmem:[%s466_s0 + $0x38] sm:$0xff] }
   0x6   :  { %v108_v6 = vmul.f32 %v258_v5, %v85_v4  ;;  %v264_v7 = vld [vmem:[%s471_s5] ss:$0 sm:$0xff]  ;;  %v109_v13 = vmul.f32 %v258_v5, %v86_v9  ;;  %v110_v18 = vmul.f32 %v258_v5, %v87_v15  ;;  %v111_v20 = vmul.f32 %v258_v5, %v88_v17  ;;  %v91_v30 = vld [vmem:[%s467_s1 + $0x30] sm:$0xff]  ;;  %v92_v44 = vld [vmem:[%s467_s1 + $0x38] sm:$0xff] }
   0x7   :  { %v27_v21 = vld [vmem:[%s466_s0 + $0x20] sm:$0xff]  ;;  %v72_v31 = vadd.f32 %v249_v2, %v49_v19  ;;  %v113_v34 = vmul.f32 %v258_v5, %v90_v28  ;;  %v74_v41 = vadd.f32 %v249_v2, %v51_v33  ;;  %v52_v42 = vmul.f32 %v244_v1, %v29_v29  ;;  %v32_v55 = vld [vmem:[%s466_s0 + $0x48] sm:$0xff]  ;;  %v33_v3 = vld [vmem:[%s466_s0 + $0x50] sm:$0xff] }
   0x8   :  { %v89_v22 = vld [vmem:[%s467_s1 + $0x20] sm:$0xff]  ;;  %v124_v24 = vadd.f32 %v108_v6, %v69_v11  ;;  %v50_v27 = vmul.f32 %v244_v1, %v27_v21  ;;  %v125_v36 = vadd.f32 %v109_v13, %v70_v25  ;;  %v126_v37 = vadd.f32 %v110_v18, %v71_v26  ;;  %v94_v60 = vld [vmem:[%s467_s1 + $0x48] sm:$0xff]  ;;  %v95_v4 = vld [vmem:[%s467_s1 + $0x50] sm:$0xff] }
   0x9   :  { %v112_v32 = vmul.f32 %v258_v5, %v89_v22  ;;  %v127_v40 = vadd.f32 %v111_v20, %v72_v31  ;;  %v114_v43 = vmul.f32 %v258_v5, %v91_v30  ;;  %v129_v50 = vadd.f32 %v113_v34, %v74_v41  ;;  %v31_v53 = vld [vmem:[%s466_s0 + $0x40] sm:$0xff]  ;;  %v34_v11 = vld [vmem:[%s466_s0 + $0x58] sm:$0xff]  ;;  %v36_v23 = vld [vmem:[%s466_s0 + $0x68] sm:$0xff] }
   0xa   :  { %v147_v35 = vadd.f32 %v264_v7, %v124_v24  ;;  %v73_v38 = vadd.f32 %v249_v2, %v50_v27  ;;  %v148_v46 = vadd.f32 %v264_v7, %v125_v36  ;;  %v149_v47 = vadd.f32 %v264_v7, %v126_v37  ;;  %v93_v54 = vld [vmem:[%s467_s1 + $0x40] sm:$0xff]  ;;  %v96_v12 = vld [vmem:[%s467_s1 + $0x58] sm:$0xff]  ;;  %v37_v33 = vld [vmem:[%s466_s0 + $0x70] sm:$0xff] }
   0xb   :  { %v150_v49 = vadd.f32 %v264_v7, %v127_v40  ;;  %v75_v51 = vadd.f32 %v249_v2, %v52_v42  ;;  %v53_v52 = vmul.f32 %v244_v1, %v30_v39  ;;  %v115_v59 = vmul.f32 %v258_v5, %v92_v44  ;;  %v35_v17 = vld [vmem:[%s466_s0 + $0x60] sm:$0xff]  ;;  %v99_v42 = vld [vmem:[%s467_s1 + $0x70] sm:$0xff] }
   0xc   :  { %v163_v45 = vmax.f32 %v147_v35, 0.0  ;;  %v128_v48 = vadd.f32 %v112_v32, %v73_v38  ;;  %v164_v56 = vmax.f32 %v148_v46, 0.0  ;;  %v165_v57 = vmax.f32 %v149_v47, 0.0  ;;  %v97_v22 = vld [vmem:[%s467_s1 + $0x60] sm:$0xff]  ;;  %v98_v32 = vld [vmem:[%s467_s1 + $0x68] sm:$0xff]  ;;  %v38_v47 = vld [vmem:[%s466_s0 + $0x78] sm:$0xff] }
   0xd   :  { %v166_v61 = vmax.f32 %v150_v49, 0.0  ;;  %v152_v62 = vadd.f32 %v264_v7, %v129_v50  ;;  %v130_v63 = vadd.f32 %v114_v43, %v75_v51  ;;  %v76_v0 = vadd.f32 %v249_v2, %v53_v52 }
   0xe   :  { %179 = vst [vmem:[%s472_s6] sm:$0xff] %v163_v45  ;;  %v151_v58 = vadd.f32 %v264_v7, %v128_v48  ;;  %180 = vst [vmem:[%s472_s6 + $0x8] sm:$0xff] %v164_v56  ;;  %v54_v8 = vmul.f32 %v244_v1, %v31_v53  ;;  %v116_v9 = vmul.f32 %v258_v5, %v93_v54  ;;  %v100_v48 = vld [vmem:[%s467_s1 + $0x78] sm:$0xff] }
   0xf   :  { %181 = vst [vmem:[%s472_s6 + $0x10] sm:$0xff] %v165_v57  ;;  %v55_v10 = vmul.f32 %v244_v1, %v32_v55  ;;  %182 = vst [vmem:[%s472_s6 + $0x18] sm:$0xff] %v166_v61  ;;  %v168_v13 = vmax.f32 %v152_v62, 0.0  ;;  %v153_v14 = vadd.f32 %v264_v7, %v130_v63  ;;  %v131_v15 = vadd.f32 %v115_v59, %v76_v0 }
  0x10   :  { %v167_v6 = vmax.f32 %v151_v58, 0.0  ;;  %v117_v16 = vmul.f32 %v258_v5, %v94_v60  ;;  %v77_v18 = vadd.f32 %v249_v2, %v54_v8  ;;  %v56_v20 = vmul.f32 %v244_v1, %v33_v3 }
  0x11   :  { %v78_v19 = vadd.f32 %v249_v2, %v55_v10  ;;  %v118_v21 = vmul.f32 %v258_v5, %v95_v4  ;;  %184 = vst [vmem:[%s472_s6 + $0x28] sm:$0xff] %v168_v13  ;;  %v169_v24 = vmax.f32 %v153_v14, 0.0  ;;  %v154_v25 = vadd.f32 %v264_v7, %v131_v15 }
  0x12   :  { %183 = vst [vmem:[%s472_s6 + $0x20] sm:$0xff] %v167_v6  ;;  %v57_v26 = vmul.f32 %v244_v1, %v34_v11  ;;  %v119_v27 = vmul.f32 %v258_v5, %v96_v12  ;;  %v132_v28 = vadd.f32 %v116_v9, %v77_v18  ;;  %v79_v30 = vadd.f32 %v249_v2, %v56_v20 }
  0x13   :  { %v133_v29 = vadd.f32 %v117_v16, %v78_v19  ;;  %v58_v31 = vmul.f32 %v244_v1, %v35_v17  ;;  %185 = vst [vmem:[%s472_s6 + $0x30] sm:$0xff] %v169_v24  ;;  %v170_v34 = vmax.f32 %v154_v25, 0.0  ;;  %v120_v36 = vmul.f32 %v258_v5, %v97_v22 }
  0x14   :  { %v80_v35 = vadd.f32 %v249_v2, %v57_v26  ;;  %v59_v37 = vmul.f32 %v244_v1, %v36_v23  ;;  %v155_v38 = vadd.f32 %v264_v7, %v132_v28  ;;  %v134_v40 = vadd.f32 %v118_v21, %v79_v30 }
  0x15   :  { %v156_v39 = vadd.f32 %v264_v7, %v133_v29  ;;  %v81_v41 = vadd.f32 %v249_v2, %v58_v31  ;;  %186 = vst [vmem:[%s472_s6 + $0x38] sm:$0xff] %v170_v34  ;;  %v121_v45 = vmul.f32 %v258_v5, %v98_v32  ;;  %v60_v46 = vmul.f32 %v244_v1, %v37_v33 }
  0x16   :  { %v135_v43 = vadd.f32 %v119_v27, %v80_v35  ;;  %v82_v44 = vadd.f32 %v249_v2, %v59_v37  ;;  %v171_v49 = vmax.f32 %v155_v38, 0.0  ;;  %v157_v51 = vadd.f32 %v264_v7, %v134_v40 }
  0x17   :  { %v172_v50 = vmax.f32 %v156_v39, 0.0  ;;  %v136_v52 = vadd.f32 %v120_v36, %v81_v41  ;;  %v83_v55 = vadd.f32 %v249_v2, %v60_v46  ;;  %v122_v56 = vmul.f32 %v258_v5, %v99_v42 }
  0x18   :  { %v158_v53 = vadd.f32 %v264_v7, %v135_v43  ;;  %v137_v54 = vadd.f32 %v121_v45, %v82_v44  ;;  %187 = vst [vmem:[%s472_s6 + $0x40] sm:$0xff] %v171_v49  ;;  %v173_v57 = vmax.f32 %v157_v51, 0.0  ;;  %v61_v59 = vmul.f32 %v244_v1, %v38_v47 }
  0x19   :  { %188 = vst [vmem:[%s472_s6 + $0x48] sm:$0xff] %v172_v50  ;;  %v159_v58 = vadd.f32 %v264_v7, %v136_v52  ;;  %v123_v60 = vmul.f32 %v258_v5, %v100_v48  ;;  %v138_v63 = vadd.f32 %v122_v56, %v83_v55 }
  0x1a   :  { %v174_v61 = vmax.f32 %v158_v53, 0.0  ;;  %v160_v62 = vadd.f32 %v264_v7, %v137_v54  ;;  %189 = vst [vmem:[%s472_s6 + $0x50] sm:$0xff] %v173_v57  ;;  %v84_v3 = vadd.f32 %v249_v2, %v61_v59 }
  0x1b   :  { %v175_v0 = vmax.f32 %v159_v58, 0.0  ;;  %v161_v1 = vadd.f32 %v264_v7, %v138_v63 }
  0x1c   :  { %190 = vst [vmem:[%s472_s6 + $0x58] sm:$0xff] %v174_v61  ;;  %v176_v4 = vmax.f32 %v160_v62, 0.0  ;;  %v139_v5 = vadd.f32 %v123_v60, %v84_v3 }
  0x1d   :  { %191 = vst [vmem:[%s472_s6 + $0x60] sm:$0xff] %v175_v0  ;;  %v177_v6 = vmax.f32 %v161_v1, 0.0 }
  0x1e   :  { %192 = vst [vmem:[%s472_s6 + $0x68] sm:$0xff] %v176_v4  ;;  %v162_v8 = vadd.f32 %v264_v7, %v139_v5 }
  0x1f   :  { %193 = vst [vmem:[%s472_s6 + $0x70] sm:$0xff] %v177_v6 }
  0x20   :  { %v178_v2 = vmax.f32 %v162_v8, 0.0 }
  0x22   :  { %194 = vst [vmem:[%s472_s6 + $0x78] sm:$0xff] %v178_v2 }

// kernel: _lambda_.9
= control target key start
LH: loop header
LB: loop body
LE: loop exit
PB: predicated region body
PF: predicated region fallthrough
CT: control target
= control target key end

     0   :  { %s2433_s12 = smov 0   ;;  %s2816_s0 = inlined_call_operand.vmem [shape: f32[2,36,9,128], index: 0, kind: input, shape index: {}]   ;;  %s2817_s1 = inlined_call_operand.vmem [shape: bf16[9,128,128], index: 1, kind: input, shape index: {}]   ;;  %s2818_s2 = inlined_call_operand.vmem [shape: f32[2,8,8,128], index: 2, kind: output, shape index: {0}]   ;;  %s2819_s3 = inlined_call_operand.vmem [shape: f32[2,2,128], index: 3, kind: output, shape index: {1}]  }
   0x1 LB: > { %s1652_s13 = sadd.s32 4294967295, %s2411_s12   ;;  %p1656_p0 = scmp.ge.s32.totalorder %s2411_s12, 1  ;;  %s2411_s12 = sphi %s2433_s12, %s14_s12  }
   0x2   : > { %p140_p1 = scmp.lt.s32.totalorder %s2411_s12, 3 }
   0x4   : > { %p141_p2 = pnand %p1656_p0, %p140_p1 }
   0x5   : > { %v2333_v0 = vld [vmem:[%s2817_s1 + $0x40] sm:$0xff] (!%p141_p2)   ;;  %p168_p3 = scmp.lt.s32.totalorder (!%p141_p2), %s1652_s13, 1  ;;  %v2335_v2 = vld [vmem:[%s2817_s1 + $0x48] sm:$0xff] (!%p141_p2)   ;;  %v2337_v4 = vld [vmem:[%s2817_s1 + $0x50] sm:$0xff] (!%p141_p2)   ;;  %vm1563_vm0 = vcmask (!%p141_p2), 1040384  }
   0x6   : > { %144 = sbr.rel (%p141_p2) target bundleno = 414 (0x19e), region = 28  ;;  %v2334_v1 = vld [vmem:[%s2817_s1 + $0x100] sm:$0xff] (!%p141_p2)   ;;  %2028 = vmatprep.subr.bf16.mxu1 (!%p141_p2), %v2333_v0  ;;  %v2336_v3 = vld [vmem:[%s2817_s1 + $0x108] sm:$0xff] (!%p141_p2)   ;;  %v2338_v5 = vld [vmem:[%s2817_s1 + $0x110] sm:$0xff] (!%p141_p2)  }
   0x7   : > { %2124 = vmatprep.subr.bf16.mxu0 (!%p141_p2), %v2334_v1  ;;  %2029 = vmatpush3.bf16.msra.mxu1 (!%p141_p2), %v2333_v0  ;;  %v2339_v6 = vld [vmem:[%s2817_s1 + $0x58] sm:$0xff] (!%p141_p2)   ;;  %v2341_v8 = vld [vmem:[%s2817_s1 + $0x60] sm:$0xff] (!%p141_p2)   ;;  %v2343_v10 = vld [vmem:[%s2817_s1 + $0x68] sm:$0xff] (!%p141_p2)  }
   0x8   : > { %2125 = vmatpush3.bf16.msra.mxu0 (!%p141_p2), %v2334_v1  ;;  %2030 = vmatprep.subr.bf16.mxu1 (!%p141_p2), %v2335_v2  ;;  %v2340_v7 = vld [vmem:[%s2817_s1 + $0x118] sm:$0xff] (!%p141_p2)   ;;  %v2342_v9 = vld [vmem:[%s2817_s1 + $0x120] sm:$0xff] (!%p141_p2)   ;;  %v2344_v13 = vld [vmem:[%s2817_s1 + $0x128] sm:$0xff] (!%p141_p2)  }
   0x9   : > { %2126 = vmatprep.subr.bf16.mxu0 (!%p141_p2), %v2336_v3  ;;  %v2345_v19 = vld [vmem:[%s2817_s1 + $0x70] sm:$0xff] (!%p141_p2)   ;;  %v2347_v22 = vld [vmem:[%s2817_s1 + $0x78] sm:$0xff] (!%p141_p2)   ;;  %v2349_v24 = vld [vmem:[%s2817_s1] sm:$0xff] (!%p141_p2)  }
   0xa   : > { %v2346_v21 = vld [vmem:[%s2817_s1 + $0x130] sm:$0xff] (!%p141_p2)   ;;  %v2348_v23 = vld [vmem:[%s2817_s1 + $0x138] sm:$0xff] (!%p141_p2)   ;;  %v2350_v28 = vld [vmem:[%s2817_s1 + $0x140] sm:$0xff] (!%p141_p2)  }
   0xb   : > { %2031 = vmatpush3.bf16.msra.mxu1 (!%p141_p2), %v2335_v2  ;;  %v2351_v34 = vld [vmem:[%s2817_s1 + $0x8] sm:$0xff] (!%p141_p2)   ;;  %v2353_v39 = vld [vmem:[%s2817_s1 + $0x10] sm:$0xff] (!%p141_p2)   ;;  %v2355_v53 = vld [vmem:[%s2817_s1 + $0x18] sm:$0xff] (!%p141_p2)  }
   0xc   : > { %2127 = vmatpush3.bf16.msra.mxu0 (!%p141_p2), %v2336_v3  ;;  %2032 = vmatprep.subr.bf16.mxu1 (!%p141_p2), %v2337_v4  ;;  %v2352_v37 = vld [vmem:[%s2817_s1 + $0x148] sm:$0xff] (!%p141_p2)   ;;  %v2354_v46 = vld [vmem:[%s2817_s1 + $0x150] sm:$0xff] (!%p141_p2)   ;;  %v2356_v54 = vld [vmem:[%s2817_s1 + $0x158] sm:$0xff] (!%p141_p2)  }
   0xd   : > { %s2821_s13 = smov (!%p168_p3, %s1652_s13), 1  ;;  %2128 = vmatprep.subr.bf16.mxu0 %v2338_v5  ;;  %v2357_v57 = vld [vmem:[%s2817_s1 + $0x20] sm:$0xff]   ;;  %v2359_v59 = vld [vmem:[%s2817_s1 + $0x28] sm:$0xff]   ;;  %v2361_v61 = vld [vmem:[%s2817_s1 + $0x30] sm:$0xff]  }
   0xe   : > { %s2324_s30 = smul.u32 576, %s2821_s13  ;;  %v2358_v58 = vld [vmem:[%s2817_s1 + $0x160] sm:$0xff]   ;;  %v2360_v60 = vld [vmem:[%s2817_s1 + $0x168] sm:$0xff]   ;;  %v2362_v62 = vld [vmem:[%s2817_s1 + $0x170] sm:$0xff]   ;;  %s1660_s20 = sshll.u32 %s2821_s13, 1 }
   0xf   : > { %2033 = vmatpush3.bf16.msra.mxu1 %v2337_v4  ;;  %v2363_v63 = vld [vmem:[%s2817_s1 + $0x38] sm:$0xff]   ;;  %v2365_v1 = vld [vmem:[%s2817_s1 + $0x80] sm:$0xff]   ;;  %s181_s23 = scalar_lea.vmem %s2819_s3, %s1660_s20 }
  0x10   : > { %2129 = vmatpush3.bf16.msra.mxu0 %v2338_v5  ;;  %2034 = vmatprep.subr.bf16.mxu1 %v2339_v6  ;;  %s2477_s10 = scalar_lea.vmem %s2816_s0, %s2324_s30  ;;  %v2364_v0 = vld [vmem:[%s2817_s1 + $0x178] sm:$0xff]  }
  0x11   : > { %2130 = vmatprep.subr.bf16.mxu0 %v2340_v7  ;;  %v1661_v11 = vld [vmem:[%s2477_s10 + $0x90] sm:$0xff]  ;;  %v2484_v12 = vld [vmem:[%s2477_s10 + $0xa0] sm:$0xff] }
  0x12   : > { %v220_v14 = vpack.c.bf16 %v2484_v12, %v1661_v11  ;;  %v1757_v15 = vld [vmem:[%s2477_s10 + $0x1b0] sm:$0xff]  ;;  %v1758_v16 = vld [vmem:[%s2477_s10 + $0x1c0] sm:$0xff] }
  0x13   : > { %2035 = vmatpush3.bf16.msra.mxu1 %v2339_v6  ;;  %v777_v17 = vpack.c.bf16 %v1758_v16, %v1757_v15  ;;  %v2493_v18 = vld [vmem:[%s2477_s10 + $0xb0] sm:$0xff]  ;;  %v2513_v25 = vld [vmem:[%s2477_s10 + $0xc0] sm:$0xff]  ;;  %v2368_v15 = vld [vmem:[%s2817_s1 + $0x188] sm:$0xff]  }
  0x14   : > { %2131 = vmatpush3.bf16.msra.mxu0 %v2340_v7  ;;  %2036 = vmatprep.subr.bf16.mxu1 %v2341_v8  ;;  %v1229_v20 = vpack.c.bf16 %v2493_v18, %v2484_v12  ;;  %v1759_v26 = vld [vmem:[%s2477_s10 + $0x1d0] sm:$0xff]  ;;  %v1760_v27 = vld [vmem:[%s2477_s10 + $0x1e0] sm:$0xff]  ;;  %v221_v29 = vpack.c.bf16 %v2513_v25, %v2493_v18 }
  0x15   : > { %2132 = vmatprep.subr.bf16.mxu0 %v2342_v9  ;;  %2044 = vmatprep.mubr.bf16.mxu1 %v220_v14  ;;  %v2523_v30 = vld [vmem:[%s2477_s10 + $0xd0] sm:$0xff]  ;;  %v778_v31 = vpack.c.bf16 %v1760_v27, %v1759_v26  ;;  %v2526_v32 = vld [vmem:[%s2477_s10 + $0xe0] sm:$0xff] }
  0x16   : > { %2140 = vmatprep.mubr.bf16.mxu0 %v777_v17  ;;  %v1230_v33 = vpack.c.bf16 %v2523_v30, %v2513_v25  ;;  %v1761_v35 = vld [vmem:[%s2477_s10 + $0x1f0] sm:$0xff]  ;;  %v1762_v36 = vld [vmem:[%s2477_s10 + $0x200] sm:$0xff]  ;;  %v222_v38 = vpack.c.bf16 %v2526_v32, %v2523_v30  ;;  %v2400_v30 = vld [vmem:[%s2817_s1 + $0x218] sm:$0xff]  }
  0x17   : > { %2037 = vmatpush3.bf16.msra.mxu1 %v2341_v8  ;;  %v779_v40 = vpack.c.bf16 %v1762_v36, %v1761_v35  ;;  %v2544_v41 = vld [vmem:[%s2477_s10 + $0xf0] sm:$0xff]  ;;  %v2547_v42 = vld [vmem:[%s2477_s10 + $0x100] sm:$0xff]  ;;  %v2372_v35 = vld [vmem:[%s2817_s1 + $0x198] sm:$0xff]  }
  0x18   : > { %2133 = vmatpush3.bf16.msra.mxu0 %v2342_v9  ;;  %2038 = vmatprep.subr.bf16.mxu1 %v2343_v10  ;;  %v1763_v43 = vld [vmem:[%s2477_s10 + $0x210] sm:$0xff]  ;;  %v1231_v44 = vpack.c.bf16 %v2544_v41, %v2526_v32  ;;  %v1764_v45 = vld [vmem:[%s2477_s10 + $0x220] sm:$0xff]  ;;  %v223_v48 = vpack.c.bf16 %v2547_v42, %v2544_v41  ;;  %v2402_v41 = vld [vmem:[%s2817_s1 + $0x228] sm:$0xff]  }
  0x19   : > { %2134 = vmatprep.subr.bf16.mxu0 %v2344_v13  ;;  %v183_v47 = vld [vmem:[%s2477_s10] sm:$0xff]  ;;  %v2560_v49 = vld [vmem:[%s2477_s10 + $0x10] sm:$0xff]  ;;  %v780_v50 = vpack.c.bf16 %v1764_v45, %v1763_v43  ;;  %v2376_v43 = vld [vmem:[%s2817_s1 + $0x1a8] sm:$0xff]  }
  0x1a   : > { %v1789_v51 = vld [vmem:[%s2477_s10 + $0x121] sm:$0xff]  ;;  %v1790_v52 = vld [vmem:[%s2477_s10 + $0x131] sm:$0xff]  ;;  %v191_v55 = vpack.c.bf16 %v2560_v49, %v183_v47 }
  0x1b   : > { %2039 = vmatpush3.bf16.msra.mxu1 %v2343_v10  ;;  %v927_v56 = vpack.c.bf16 %v1790_v52, %v1789_v51  ;;  %v185_v2 = vld [vmem:[%s2477_s10 + $0x20] sm:$0xff]  ;;  %v2600_v3 = vld [vmem:[%s2477_s10 + $0x30] sm:$0xff]  ;;  %v2367_v10 = vld [vmem:[%s2817_s1 + $0x88] sm:$0xff]  }
  0x1c   : > { %2135 = vmatpush3.bf16.msra.mxu0 %v2344_v13  ;;  %2040 = vmatprep.subr.bf16.mxu1 %v2345_v19  ;;  %v1791_v4 = vld [vmem:[%s2477_s10 + $0x141] sm:$0xff]  ;;  %v1792_v5 = vld [vmem:[%s2477_s10 + $0x151] sm:$0xff]  ;;  %v192_v9 = vpack.c.bf16 %v2600_v3, %v185_v2 }
  0x1d   : > { %2136 = vmatprep.subr.bf16.mxu0 %v2346_v21  ;;  %v2366_v6 = vld [vmem:[%s2817_s1 + $0x180] sm:$0xff]   ;;  %v2611_v8 = vld [vmem:[%s2477_s10 + $0x50] sm:$0xff]  ;;  %v928_v13 = vpack.c.bf16 %v1792_v5, %v1791_v4  ;;  %v2379_v47 = vld [vmem:[%s2817_s1 + $0xb8] sm:$0xff]  }
  0x1e   : > { %v2608_v7 = vld [vmem:[%s2477_s10 + $0x40] sm:$0xff]  ;;  %v1794_v14 = vld [vmem:[%s2477_s10 + $0x171] sm:$0xff] }
  0x1f   : > { %2041 = vmatpush3.bf16.msra.mxu1 %v2345_v19  ;;  %v1793_v11 = vld [vmem:[%s2477_s10 + $0x161] sm:$0xff]  ;;  %v193_v16 = vpack.c.bf16 %v2611_v8, %v2608_v7  ;;  %v2369_v19 = vld [vmem:[%s2817_s1 + $0x90] sm:$0xff]  }
  0x20   : > { %2137 = vmatpush3.bf16.msra.mxu0 %v2346_v21  ;;  %2042 = vmatprep.subr.bf16.mxu1 %v2347_v22  ;;  %v2625_v17 = vld [vmem:[%s2477_s10 + $0x60] sm:$0xff]  ;;  %v929_v21 = vpack.c.bf16 %v1794_v14, %v1793_v11  ;;  %v1796_v26 = vld [vmem:[%s2477_s10 + $0x191] sm:$0xff]  ;;  %v2391_v11 = vld [vmem:[%s2817_s1 + $0xe8] sm:$0xff]  }
  0x21   : > { %2138 = vmatprep.subr.bf16.mxu0 %v2348_v23  ;;  %v467_v27 = vld [vmem:[%s2477_s10 + $0x1] sm:$0xff]  ;;  %v2377_v45 = vld [vmem:[%s2817_s1 + $0xb0] sm:$0xff]   ;;  %v2396_v14 = vld [vmem:[%s2817_s1 + $0x1f8] sm:$0xff]  }
  0x22   : > { %v2381_v51 = vld [vmem:[%s2817_s1 + $0xc0] sm:$0xff]   ;;  %v1726_v4 = vld [vmem:[%s2477_s10 + $0x130] sm:$0xff] }
  0x23   : > { %2043 = vmatpush3.bf16.msra.mxu1 %v2347_v22  ;;  %v2631_v22 = vld [vmem:[%s2477_s10 + $0x70] sm:$0xff]  ;;  %v2382_v52 = vld [vmem:[%s2817_s1 + $0x1c0] sm:$0xff]  }
  0x24   : > { %2139 = vmatpush3.bf16.msra.mxu0 %v2348_v23  ;;  %2052 = vmatprep.subr.bf16.mxu1 %v2349_v24  ;;  %v2370_v23 = vld [vmem:[%s2817_s1 + $0x190] sm:$0xff]   ;;  %v2401_v32 = vld [vmem:[%s2817_s1 + $0x220] sm:$0xff]  }
  0x25   : > { %2148 = vmatprep.subr.bf16.mxu0 %v2350_v28  ;;  %v2393_v12 = vld [vmem:[%s2817_s1 + $0xf0] sm:$0xff]  }
  0x26   : > { %2045 = vmatmul.mubr.bf16.vlgmr.msra.gmra.mrb[0].mxu1 %v221_v29  ;;  %v2642_v29 = vld [vmem:[%s2477_s10 + $0x11] sm:$0xff] }
  0x27   : > { %2053 = vmatpush3.bf16.msra.mxu1 %v2349_v24  ;;  %2141 = vmatmul.mubr.bf16.vlgmr.msra.gmra.mrb[0].mxu0 %v778_v31  ;;  %v1795_v24 = vld [vmem:[%s2477_s10 + $0x181] sm:$0xff]  ;;  %v475_v36 = vpack.c.bf16 %v2642_v29, %v467_v27  ;;  %v2394_v18 = vld [vmem:[%s2817_s1 + $0x1f0] sm:$0xff]  }
  0x28   : > { %2149 = vmatpush3.bf16.msra.mxu0 %v2350_v28  ;;  %2054 = vmatprep.subr.bf16.mxu1 %v2351_v34  ;;  %v194_v28 = vpack.c.bf16 %v2631_v22, %v2625_v17  ;;  %v930_v31 = vpack.c.bf16 %v1796_v26, %v1795_v24  ;;  %v1731_v26 = vld [vmem:[%s2477_s10 + $0x180] sm:$0xff]  ;;  %v1732_v27 = vld [vmem:[%s2477_s10 + $0x190] sm:$0xff] }
  0x29   : > { %2150 = vmatprep.subr.bf16.mxu0 %v2352_v37  ;;  %2048 = vmatprep.mubr.bf16.mxu1 %v222_v38  ;;  %v2373_v38 = vld [vmem:[%s2817_s1 + $0xa0] sm:$0xff]  }
  0x2a   : > { %2144 = vmatprep.mubr.bf16.mxu0 %v779_v40  ;;  %v2375_v40 = vld [vmem:[%s2817_s1 + $0xa8] sm:$0xff]  }
  0x2b   : > { %2055 = vmatpush3.bf16.msra.mxu1 %v2351_v34  ;;  %v2371_v34 = vld [vmem:[%s2817_s1 + $0x98] sm:$0xff]  }
  0x2c   : > { %2151 = vmatpush3.bf16.msra.mxu0 %v2352_v37  ;;  %2056 = vmatprep.subr.bf16.mxu1 %v2353_v39  ;;  %v1078_v37 = vpack.c.bf16 %v185_v2, %v2560_v49  ;;  %v2677_v49 = vld [vmem:[%s2477_s10 + $0x21] sm:$0xff] }
  0x2d   : > { %2152 = vmatprep.subr.bf16.mxu0 %v2354_v46 }
  0x2e   : > { %2049 = vmatmul.mubr.bf16.gmra.mrb[4].mxu1 %v223_v48  ;;  %v2380_v48 = vld [vmem:[%s2817_s1 + $0x1b8] sm:$0xff]  }
  0x2f   : > { %2057 = vmatpush3.bf16.msra.mxu1 %v2353_v39  ;;  %2145 = vmatmul.mubr.bf16.gmra.mrb[4].mxu0 %v780_v50  ;;  %v2374_v39 = vld [vmem:[%s2817_s1 + $0x1a0] sm:$0xff]   ;;  %v2680_v50 = vld [vmem:[%s2477_s10 + $0x31] sm:$0xff] }
  0x30   : > { %2153 = vmatpush3.bf16.msra.mxu0 %v2354_v46  ;;  %2058 = vmatprep.subr.bf16.mxu1 %v2355_v53  ;;  %v2378_v46 = vld [vmem:[%s2817_s1 + $0x1b0] sm:$0xff]  }
  0x31   : > { %2154 = vmatprep.subr.bf16.mxu0 %v2356_v54  ;;  %2068 = vmatprep.mubr.bf16.mxu1 %v191_v55  ;;  %v2694_v55 = vld [vmem:[%s2477_s10 + $0x51] sm:$0xff] }
  0x32   : > { %2164 = vmatprep.mubr.bf16.mxu0 %v927_v56  ;;  %v1079_v56 = vpack.c.bf16 %v2608_v7, %v2600_v3  ;;  %v1725_v3 = vld [vmem:[%s2477_s10 + $0x120] sm:$0xff]  ;;  %v2388_v7 = vld [vmem:[%s2817_s1 + $0x1d8] sm:$0xff]  }
  0x33   : > { %2059 = vmatpush3.bf16.msra.mxu1 %v2355_v53  ;;  %v476_v53 = vpack.c.bf16 %v2680_v50, %v2677_v49 }
  0x34   : > { %2155 = vmatpush3.bf16.msra.mxu0 %v2356_v54  ;;  %2060 = vmatprep.subr.bf16.mxu1 %v2357_v57  ;;  %v2691_v54 = vld [vmem:[%s2477_s10 + $0x41] sm:$0xff] }
  0x35   : > { %2156 = vmatprep.subr.bf16.mxu0 %v2358_v58 }
  0x37   : > { %2061 = vmatpush3.bf16.msra.mxu1 %v2357_v57  ;;  %v2383_v57 = vld [vmem:[%s2817_s1 + $0xc8] sm:$0xff]  }
  0x38   : > { %2157 = vmatpush3.bf16.msra.mxu0 %v2358_v58  ;;  %2062 = vmatprep.subr.bf16.mxu1 %v2359_v59  ;;  %v2384_v58 = vld [vmem:[%s2817_s1 + $0x1c8] sm:$0xff]  }
  0x39   : > { %2158 = vmatprep.subr.bf16.mxu0 %v2360_v60 }
  0x3b   : > { %2063 = vmatpush3.bf16.msra.mxu1 %v2359_v59  ;;  %v477_v59 = vpack.c.bf16 %v2694_v55, %v2691_v54 }
  0x3c   : > { %2159 = vmatpush3.bf16.msra.mxu0 %v2360_v60  ;;  %2064 = vmatprep.subr.bf16.mxu1 %v2361_v61  ;;  %v1080_v60 = vpack.c.bf16 %v2625_v17, %v2611_v8  ;;  %v626_v8 = vpack.c.bf16 %v1726_v4, %v1725_v3  ;;  %v2397_v17 = vld [vmem:[%s2817_s1 + $0x200] sm:$0xff]  }
  0x3d   : > { %2160 = vmatprep.subr.bf16.mxu0 %v2362_v62 }
  0x3f   : > { %2065 = vmatpush3.bf16.msra.mxu1 %v2361_v61  ;;  %v2709_v61 = vld [vmem:[%s2477_s10 + $0x61] sm:$0xff] }
  0x40   : > { %2161 = vmatpush3.bf16.msra.mxu0 %v2362_v62  ;;  %2066 = vmatprep.subr.bf16.mxu1 %v2363_v63  ;;  %v2712_v62 = vld [vmem:[%s2477_s10 + $0x71] sm:$0xff] }
  0x41   : > { %2162 = vmatprep.subr.bf16.mxu0 %v2364_v0  ;;  %v478_v2 = vpack.c.bf16 %v2712_v62, %v2709_v61 }
  0x43   : > { %2067 = vmatpush3.bf16.msra.mxu1 %v2363_v63  ;;  %v2385_v63 = vld [vmem:[%s2817_s1 + $0xd0] sm:$0xff]  }
  0x44   : > { %2163 = vmatpush3.bf16.msra.mxu0 %v2364_v0  ;;  %2076 = vmatprep.subr.bf16.mxu1 %v2365_v1  ;;  %v1828_v0 = vld [vmem:[%s2477_s10 + $0x80] sm:$0xff] }
  0x45   : > { %2172 = vmatprep.subr.bf16.mxu0 %v2366_v6  ;;  %v1081_v5 = vpack.c.bf16 %v1828_v0, %v2631_v22  ;;  %v1730_v22 = vld [vmem:[%s2477_s10 + $0x170] sm:$0xff] }
  0x46   : > { %2069 = vmatmul.mubr.bf16.vlgmr.msra.gmra.mrb[0].mxu1 %v192_v9  ;;  %v2389_v9 = vld [vmem:[%s2817_s1 + $0xe0] sm:$0xff]  }
  0x47   : > { %2077 = vmatpush3.bf16.msra.mxu1 %v2365_v1  ;;  %2165 = vmatmul.mubr.bf16.vlgmr.msra.gmra.mrb[0].mxu0 %v928_v13  ;;  %v2386_v1 = vld [vmem:[%s2817_s1 + $0x1d0] sm:$0xff]   ;;  %v2392_v13 = vld [vmem:[%s2817_s1 + $0x1e8] sm:$0xff]  }
  0x48   : > { %2173 = vmatpush3.bf16.msra.mxu0 %v2366_v6  ;;  %2078 = vmatprep.subr.bf16.mxu1 %v2367_v10  ;;  %v2387_v6 = vld [vmem:[%s2817_s1 + $0xd8] sm:$0xff]  }
  0x49   : > { %2174 = vmatprep.subr.bf16.mxu0 %v2368_v15  ;;  %2072 = vmatprep.mubr.bf16.mxu1 %v193_v16  ;;  %v1728_v16 = vld [vmem:[%s2477_s10 + $0x150] sm:$0xff] }
  0x4a   : > { %2168 = vmatprep.mubr.bf16.mxu0 %v929_v21  ;;  %v1729_v21 = vld [vmem:[%s2477_s10 + $0x160] sm:$0xff] }
  0x4b   : > { %2079 = vmatpush3.bf16.msra.mxu1 %v2367_v10  ;;  %v2390_v10 = vld [vmem:[%s2817_s1 + $0x1e0] sm:$0xff]   ;;  %v628_v24 = vpack.c.bf16 %v1730_v22, %v1729_v21 }
  0x4c   : > { %2175 = vmatpush3.bf16.msra.mxu0 %v2368_v15  ;;  %2080 = vmatprep.subr.bf16.mxu1 %v2369_v19  ;;  %v1727_v15 = vld [vmem:[%s2477_s10 + $0x140] sm:$0xff] }
  0x4d   : > { %2176 = vmatprep.subr.bf16.mxu0 %v2370_v23 }
  0x4e   : > { %2073 = vmatmul.mubr.bf16.gmra.mrb[4].mxu1 %v194_v28  ;;  %v1860_v28 = vld [vmem:[%s2477_s10 + $0x110] sm:$0xff] }
  0x4f   : > { %2081 = vmatpush3.bf16.msra.mxu1 %v2369_v19  ;;  %2169 = vmatmul.mubr.bf16.gmra.mrb[4].mxu0 %v930_v31  ;;  %v627_v19 = vpack.c.bf16 %v1728_v16, %v1727_v15  ;;  %v2399_v31 = vld [vmem:[%s2817_s1 + $0x210] sm:$0xff]   ;;  %v1232_v25 = vpack.c.bf16 %v1860_v28, %v2547_v42 }
  0x50   : > { %2177 = vmatpush3.bf16.msra.mxu0 %v2370_v23  ;;  %2082 = vmatprep.subr.bf16.mxu1 %v2371_v34  ;;  %v2398_v23 = vld [vmem:[%s2817_s1 + $0x208] sm:$0xff]   ;;  %v2403_v42 = vld [vmem:[%s2817_s1 + $0x230] sm:$0xff]  }
  0x51   : > { %2178 = vmatprep.subr.bf16.mxu0 %v2372_v35  ;;  %2092 = vmatprep.mubr.bf16.mxu1 %v475_v36 }
  0x52   : > { %2188 = vmatprep.mubr.bf16.mxu0 %v1078_v37  ;;  %v1380_v37 = vpack.c.bf16 %v2691_v54, %v2680_v50 }
  0x53   : > { %2083 = vmatpush3.bf16.msra.mxu1 %v2371_v34  ;;  %v629_v34 = vpack.c.bf16 %v1732_v27, %v1731_v26 }
  0x54   : > { %2179 = vmatpush3.bf16.msra.mxu0 %v2372_v35  ;;  %2084 = vmatprep.subr.bf16.mxu1 %v2373_v38  ;;  %v1381_v35 = vpack.c.bf16 %v2709_v61, %v2694_v55 }
  0x55   : > { %2180 = vmatprep.subr.bf16.mxu0 %v2374_v39 }
  0x57   : > { %2085 = vmatpush3.bf16.msra.mxu1 %v2373_v38 }
  0x58   : > { %2181 = vmatpush3.bf16.msra.mxu0 %v2374_v39  ;;  %2086 = vmatprep.subr.bf16.mxu1 %v2375_v40 }
  0x59   : > { %2182 = vmatprep.subr.bf16.mxu0 %v2376_v43 }
  0x5b   : > { %2087 = vmatpush3.bf16.msra.mxu1 %v2375_v40 }
  0x5c   : > { %2183 = vmatpush3.bf16.msra.mxu0 %v2376_v43  ;;  %2088 = vmatprep.subr.bf16.mxu1 %v2377_v45 }
  0x5d   : > { %2184 = vmatprep.subr.bf16.mxu0 %v2378_v46 }
  0x5f   : > { %2089 = vmatpush3.bf16.msra.mxu1 %v2377_v45 }
  0x60   : > { %2185 = vmatpush3.bf16.msra.mxu0 %v2378_v46  ;;  %2090 = vmatprep.subr.bf16.mxu1 %v2379_v47 }
  0x61   : > { %2186 = vmatprep.subr.bf16.mxu0 %v2380_v48 }
  0x63   : > { %2091 = vmatpush3.bf16.msra.mxu1 %v2379_v47 }
  0x64   : > { %2187 = vmatpush3.bf16.msra.mxu0 %v2380_v48  ;;  %2100 = vmatprep.subr.bf16.mxu1 %v2381_v51 }
  0x65   : > { %2196 = vmatprep.subr.bf16.mxu0 %v2382_v52 }
  0x66   : > { %2093 = vmatmul.mubr.bf16.vlgmr.msra.gmra.mrb[0].mxu1 %v476_v53 }
  0x67   : > { %2101 = vmatpush3.bf16.msra.mxu1 %v2381_v51  ;;  %2189 = vmatmul.mubr.bf16.vlgmr.msra.gmra.mrb[0].mxu0 %v1079_v56 }
  0x68   : > { %2197 = vmatpush3.bf16.msra.mxu0 %v2382_v52  ;;  %2102 = vmatprep.subr.bf16.mxu1 %v2383_v57 }
  0x69   : > { %2198 = vmatprep.subr.bf16.mxu0 %v2384_v58  ;;  %2096 = vmatprep.mubr.bf16.mxu1 %v477_v59 }
  0x6a   : > { %2192 = vmatprep.mubr.bf16.mxu0 %v1080_v60 }
  0x6b   : > { %2103 = vmatpush3.bf16.msra.mxu1 %v2383_v57 }
  0x6c   : > { %2199 = vmatpush3.bf16.msra.mxu0 %v2384_v58  ;;  %2104 = vmatprep.subr.bf16.mxu1 %v2385_v63 }
  0x6d   : > { %2200 = vmatprep.subr.bf16.mxu0 %v2386_v1 }
  0x6e   : > { %2097 = vmatmul.mubr.bf16.gmra.mrb[4].mxu1 %v478_v2 }
  0x6f   : > { %2105 = vmatpush3.bf16.msra.mxu1 %v2385_v63  ;;  %2193 = vmatmul.mubr.bf16.gmra.mrb[4].mxu0 %v1081_v5 }
  0x70   : > { %2201 = vmatpush3.bf16.msra.mxu0 %v2386_v1  ;;  %2106 = vmatprep.subr.bf16.mxu1 %v2387_v6 }
  0x71   : > { %2202 = vmatprep.subr.bf16.mxu0 %v2388_v7  ;;  %2116 = vmatprep.mubr.bf16.mxu1 %v626_v8 }
  0x72   : > { %2212 = vmatprep.mubr.bf16.mxu0 %v1229_v20  ;;  %v2395_v20 = vld [vmem:[%s2817_s1 + $0xf8] sm:$0xff]  }
  0x73   : > { %2107 = vmatpush3.bf16.msra.mxu1 %v2387_v6 }
  0x74   : > { %2203 = vmatpush3.bf16.msra.mxu0 %v2388_v7  ;;  %2108 = vmatprep.subr.bf16.mxu1 %v2389_v9 }
  0x75   : > { %2204 = vmatprep.subr.bf16.mxu0 %v2390_v10 }
  0x77   : > { %2109 = vmatpush3.bf16.msra.mxu1 %v2389_v9 }
  0x78   : > { %2205 = vmatpush3.bf16.msra.mxu0 %v2390_v10  ;;  %2110 = vmatprep.subr.bf16.mxu1 %v2391_v11 }
  0x79   : > { %2206 = vmatprep.subr.bf16.mxu0 %v2392_v13 }
  0x7b   : > { %2111 = vmatpush3.bf16.msra.mxu1 %v2391_v11 }
  0x7c   : > { %2207 = vmatpush3.bf16.msra.mxu0 %v2392_v13  ;;  %2112 = vmatprep.subr.bf16.mxu1 %v2393_v12 }
  0x7d   : > { %2208 = vmatprep.subr.bf16.mxu0 %v2394_v18 }
  0x7f   : > { %2113 = vmatpush3.bf16.msra.mxu1 %v2393_v12 }
  0x80   : > { %2209 = vmatpush3.bf16.msra.mxu0 %v2394_v18  ;;  %2114 = vmatprep.subr.bf16.mxu1 %v2395_v20 }
  0x81   : > { %2210 = vmatprep.subr.bf16.mxu0 %v2396_v14 }
  0x83   : > { %2115 = vmatpush3.bf16.msra.mxu1 %v2395_v20 }
  0x84   : > { %2211 = vmatpush3.bf16.msra.mxu0 %v2396_v14  ;;  %2244 = vmatprep.subr.bf16.mxu1 %v2397_v17 }
  0x85   : > { %2220 = vmatprep.subr.bf16.mxu0 %v2397_v17 }
  0x86   : > { %2117 = vmatmul.mubr.bf16.vlgmr.msra.gmra.mrb[0].mxu1 %v627_v19 }
  0x87   : > { %2213 = vmatmul.mubr.bf16.vlgmr.msra.gmra.mrb[0].mxu0 %v1230_v33  ;;  %2252 = vmatpush3.bf16.msra.mxu1 %v2397_v17  ;;  %v1379_v33 = vpack.c.bf16 %v2677_v49, %v2642_v29  ;;  %v1892_v29 = vld [vmem:[%s2477_s10 + $0x81] sm:$0xff]  ;;  %s1919_s10 = sshll.u32 %s2821_s13, 6 }
  0x88   : > { %2221 = vmatpush3.bf16.msra.mxu0 %v2397_v17  ;;  %2245 = vmatprep.subr.bf16.mxu1 %v2398_v23  ;;  %v1382_v36 = vpack.c.bf16 %v1892_v29, %v2712_v62  ;;  %s177_s19 = scalar_lea.vmem %s2818_s2, %s1919_s10 }
  0x89   : > { %2222 = vmatprep.subr.bf16.mxu0 %v2398_v23  ;;  %2120 = vmatprep.mubr.bf16.mxu1 %v628_v24 }
  0x8a   : > { %2216 = vmatprep.mubr.bf16.mxu0 %v1231_v44  ;;  %v2404_v44 = vld [vmem:[%s2817_s1 + $0x238] sm:$0xff]  }
  0x8b   : > { %2253 = vmatpush3.bf16.msra.mxu1 %v2398_v23 }
  0x8c   : > { %2223 = vmatpush3.bf16.msra.mxu0 %v2398_v23  ;;  %2246 = vmatprep.subr.bf16.mxu1 %v2399_v31 }
  0x8d   : > { %2224 = vmatprep.subr.bf16.mxu0 %v2399_v31 }
  0x8e   : > { %2121 = vmatmul.mubr.bf16.gmra.mrb[4].mxu1 %v629_v34 }
  0x8f   : > { %2217 = vmatmul.mubr.bf16.gmra.mrb[4].mxu0 %v1232_v25  ;;  %2254 = vmatpush3.bf16.msra.mxu1 %v2399_v31 }
  0x90   : > { %2225 = vmatpush3.bf16.msra.mxu0 %v2399_v31  ;;  %2247 = vmatprep.subr.bf16.mxu1 %v2400_v30 }
  0x91   : > { %2226 = vmatprep.subr.bf16.mxu0 %v2400_v30  ;;  %2236 = vmatprep.mubr.bf16.mxu0 %v1379_v33 }
  0x92   : > { %2240 = vmatprep.mubr.bf16.mxu1 %v1381_v35 }
  0x93   : > { %2255 = vmatpush3.bf16.msra.mxu1 %v2400_v30 }
  0x94   : > { %2227 = vmatpush3.bf16.msra.mxu0 %v2400_v30  ;;  %2248 = vmatprep.subr.bf16.mxu1 %v2401_v32 }
  0x95   : > { %2228 = vmatprep.subr.bf16.mxu0 %v2401_v32 }
  0x97   : > { %2256 = vmatpush3.bf16.msra.mxu1 %v2401_v32 }
  0x98   : > { %2229 = vmatpush3.bf16.msra.mxu0 %v2401_v32  ;;  %2249 = vmatprep.subr.bf16.mxu1 %v2402_v41 }
  0x99   : > { %2230 = vmatprep.subr.bf16.mxu0 %v2402_v41 }
  0x9b   : > { %2257 = vmatpush3.bf16.msra.mxu1 %v2402_v41 }
  0x9c   : > { %2231 = vmatpush3.bf16.msra.mxu0 %v2402_v41  ;;  %2250 = vmatprep.subr.bf16.mxu1 %v2403_v42 }
  0x9d   : > { %2232 = vmatprep.subr.bf16.mxu0 %v2403_v42 }
  0x9f   : > { %2258 = vmatpush3.bf16.msra.mxu1 %v2403_v42 }
  0xa0   : > { %2233 = vmatpush3.bf16.msra.mxu0 %v2403_v42  ;;  %2251 = vmatprep.subr.bf16.mxu1 %v2404_v44 }
  0xa1   : > { %2234 = vmatprep.subr.bf16.mxu0 %v2404_v44 }
  0xa3   : > { %2259 = vmatpush3.bf16.msra.mxu1 %v2404_v44 }
  0xa4   : > { %2235 = vmatpush3.bf16.msra.mxu0 %v2404_v44 }
  0xa6   : > { %2241 = vmatmul.mubr.bf16.vlgmr.msra.gmra.mrb[8].mxu1 %v1382_v36 }
  0xa7   : > { %2237 = vmatmul.mubr.bf16.vlgmr.msra.gmra.mrb[0].mxu0 %v1380_v37 }
 0x159   : > { %v2118_v38 = vpop.f32.mrb[0].mxu1 }
 0x15a   : > { %v729_v39 = vpop.f32.mrb[1].mxu1 }
 0x15b   : > { %v2119_v40 = vpop.f32.mrb[2].mxu1 }
 0x15c   : > { %v732_v43 = vpop.f32.mrb[3].mxu1 }
 0x161   : > { %v2122_v45 = vpop.f32.mrb[4].mxu1 }
 0x162   : > { %v2218_v46 = vpop.f32.mrb[4].mxu0  ;;  %v745_v47 = vpop.f32.mrb[5].mxu1 }
 0x163   : > { %v2264_v48 = vadd.f32 %v2218_v46, %v2122_v45  ;;  %v1348_v49 = vpop.f32.mrb[5].mxu0  ;;  %v2123_v51 = vpop.f32.mrb[6].mxu1 }
 0x164   : > { %v2266_v52 = vadd.f32 %v1348_v49, %v745_v47  ;;  %v2219_v53 = vpop.f32.mrb[6].mxu0  ;;  %v748_v55 = vpop.f32.mrb[7].mxu1 }
 0x165   : > { %v2268_v56 = vadd.f32 %v2219_v53, %v2123_v51  ;;  %v1351_v57 = vpop.f32.mrb[7].mxu0 }
 0x166   : > { %v2270_v50 = vadd.f32 %v1351_v57, %v748_v55 }
 0x179   : > { %v2242_v54 = vpop.f32.mrb[8].mxu1 }
 0x17a   : > { %v2238_v58 = vpop.f32.mrb[0].mxu0  ;;  %v2265_v59 = vadd.f32 %v2264_v48, %v2242_v54  ;;  %v1498_v60 = vpop.f32.mrb[9].mxu1 }
 0x17b   : > { %v2260_v61 = vadd.f32 %v2238_v58, %v2118_v38  ;;  %v1482_v62 = vpop.f32.mrb[1].mxu0  ;;  %v2267_v63 = vadd.f32 %v2266_v52, %v1498_v60  ;;  %v2243_v0 = vpop.f32.mrb[10].mxu1 }
 0x17c   : > { %1527 = vst [vmem:[%s177_s19 + $0x30] sm:$0xff] %v2265_v59  ;;  %v2261_v1 = vadd.f32 %v1482_v62, %v729_v39  ;;  %v2239_v2 = vpop.f32.mrb[2].mxu0  ;;  %v2269_v3 = vadd.f32 %v2268_v56, %v2243_v0  ;;  %v1501_v4 = vpop.f32.mrb[11].mxu1  ;;  %v1548_v24 = vmul.f32 %v2265_v59, %v2265_v59 }
 0x17d   : > { %1523 = vst [vmem:[%s177_s19 + $0x10] sm:$0xff] %v2260_v61  ;;  %1525 = vst [vmem:[%s177_s19 + $0x20] sm:$0xff] %v2267_v63  ;;  %v2262_v5 = vadd.f32 %v2239_v2, %v2119_v40  ;;  %v1485_v6 = vpop.f32.mrb[3].mxu0  ;;  %v2271_v7 = vadd.f32 %v2270_v50, %v1501_v4  ;;  %v1544_v13 = vmul.f32 %v2260_v61, %v2260_v61 }
 0x17e   : > { %1521 = vst [vmem:[%s177_s19] sm:$0xff] %v2261_v1  ;;  %1528 = vst [vmem:[%s177_s19 + $0x38] sm:$0xff] %v2269_v3  ;;  %v2263_v8 = vadd.f32 %v1485_v6, %v732_v43  ;;  %v1542_v9 = vmul.f32 %v2261_v1, %v2261_v1  ;;  %v1546_v16 = vmul.f32 %v2267_v63, %v2267_v63 }
 0x17f   : > { %1524 = vst [vmem:[%s177_s19 + $0x18] sm:$0xff] %v2262_v5  ;;  %1526 = vst [vmem:[%s177_s19 + $0x28] sm:$0xff] %v2271_v7  ;;  %v1545_v20 = vmul.f32 %v2262_v5, %v2262_v5  ;;  %v1547_v22 = vmul.f32 %v2271_v7, %v2271_v7  ;;  %v1549_v28 = vmul.f32 %v2269_v3, %v2269_v3 }
 0x180   : > { %1522 = vst [vmem:[%s177_s19 + $0x8] sm:$0xff] %v2263_v8  ;;  %v1529_v10 = vadd.f32 %v2263_v8, %v2261_v1  ;;  %v1543_v11 = vmul.f32 %v2263_v8, %v2263_v8 }
 0x182   : > { %v1530_v12 = vadd.f32 %v2260_v61, %v1529_v10  ;;  %v1550_v18 = vadd.f32 %v1543_v11, %v1542_v9 }
 0x184   : > { %v1551_v14 = vadd.f32 %v1550_v18, %v1544_v13  ;;  %v1531_v15 = vadd.f32 %v2262_v5, %v1530_v12 }
 0x186   : > { %v1532_v17 = vadd.f32 %v2267_v63, %v1531_v15  ;;  %v1552_v19 = vadd.f32 %v1551_v14, %v1545_v20 }
 0x188   : > { %v1533_v21 = vadd.f32 %v2271_v7, %v1532_v17  ;;  %v1553_v23 = vadd.f32 %v1552_v19, %v1546_v16 }
 0x18a   : > { %v1534_v26 = vadd.f32 %v2265_v59, %v1533_v21  ;;  %v1554_v27 = vadd.f32 %v1553_v23, %v1547_v22 }
 0x18c   : > { %v1535_v31 = vadd.f32 %v2269_v3, %v1534_v26  ;;  %v1555_v34 = vadd.f32 %v1554_v27, %v1548_v24 }
 0x18e   : > { %v1536_v25 = vrot.slane %v1535_v31, 4  ;;  %v1556_v30 = vadd.f32 %v1555_v34, %v1549_v28 }
 0x190   : > { %v1537_v33 = vadd.f32 %v1536_v25, %v1535_v31  ;;  %v1557_v35 = vrot.slane %v1556_v30, 4 }
 0x192   : > { %v1538_v32 = vrot.slane %v1537_v33, 2  ;;  %v1558_v41 = vadd.f32 %v1557_v35, %v1556_v30 }
 0x194   : > { %v1539_v42 = vadd.f32 %v1538_v32, %v1537_v33  ;;  %v1559_v44 = vrot.slane %v1558_v41, 2 }
 0x196   : > { %v1540_v29 = vrot.slane %v1539_v42, 1  ;;  %v1560_v36 = vadd.f32 %v1559_v44, %v1558_v41 }
 0x198   : > { %v1561_v37 = vrot.slane %v1560_v36, 1  ;;  %v1541_v38 = vadd.f32 %v1540_v29, %v1539_v42 }
 0x19a   : > { %v1562_v39 = vadd.f32 %v1561_v37, %v1560_v36 }
 0x19c   : > { %v1564_v40 = vsel %vm1563_vm0, %v1541_v38, %v1562_v39 }
 0x19d   : > { %1565 = vst [vmem:[%s181_s23] sm:$0x3] %v1564_v40 }
 0x19e PF: > { %s14_s12 = sadd.s32 1, %s2411_s12  }
 0x19f   : > { %p11_p4 = scmp.ge.s32.totalorder %s14_s12, 4  }
 0x1a1   :  { %13 = sbr.rel (!%p11_p4) target bundleno = 1 (0x1), region = 83 }

// kernel: _lambda_.11
= control target key start
LH: loop header
LB: loop body
LE: loop exit
PB: predicated region body
PF: predicated region fallthrough
CT: control target
= control target key end

     0   :  { %s2422_s12 = smov 0   ;;  %s2791_s0 = inlined_call_operand.vmem [shape: f32[2,10,10,128], index: 0, kind: input, shape index: {}]   ;;  %s2792_s1 = inlined_call_operand.vmem [shape: bf16[9,128,128], index: 1, kind: input, shape index: {}]   ;;  %s2793_s2 = inlined_call_operand.vmem [shape: f32[2,8,8,128], index: 2, kind: output, shape index: {0}]   ;;  %s2794_s3 = inlined_call_operand.vmem [shape: f32[2,2,128], index: 3, kind: output, shape index: {1}]  }
   0x1 LB: > { %s1649_s13 = sadd.s32 4294967295, %s2400_s12   ;;  %p1653_p0 = scmp.ge.s32.totalorder %s2400_s12, 1  ;;  %s2400_s12 = sphi %s2422_s12, %s14_s12  }
   0x2   : > { %p140_p1 = scmp.lt.s32.totalorder %s2400_s12, 3 }
   0x4   : > { %p141_p2 = pnand %p1653_p0, %p140_p1 }
   0x5   : > { %v2322_v0 = vld [vmem:[%s2792_s1 + $0x40] sm:$0xff] (!%p141_p2)   ;;  %p168_p3 = scmp.lt.s32.totalorder (!%p141_p2), %s1649_s13, 1  ;;  %v2324_v2 = vld [vmem:[%s2792_s1 + $0x48] sm:$0xff] (!%p141_p2)   ;;  %v2326_v4 = vld [vmem:[%s2792_s1 + $0x50] sm:$0xff] (!%p141_p2)   ;;  %vm1560_vm0 = vcmask (!%p141_p2), 1040384  }
   0x6   : > { %144 = sbr.rel (%p141_p2) target bundleno = 414 (0x19e), region = 28  ;;  %v2323_v1 = vld [vmem:[%s2792_s1 + $0x100] sm:$0xff] (!%p141_p2)   ;;  %2017 = vmatprep.subr.bf16.mxu1 (!%p141_p2), %v2322_v0  ;;  %v2325_v3 = vld [vmem:[%s2792_s1 + $0x108] sm:$0xff] (!%p141_p2)   ;;  %v2327_v5 = vld [vmem:[%s2792_s1 + $0x110] sm:$0xff] (!%p141_p2)  }
   0x7   : > { %2113 = vmatprep.subr.bf16.mxu0 (!%p141_p2), %v2323_v1  ;;  %2018 = vmatpush3.bf16.msra.mxu1 (!%p141_p2), %v2322_v0  ;;  %v2328_v6 = vld [vmem:[%s2792_s1 + $0x58] sm:$0xff] (!%p141_p2)   ;;  %v2330_v8 = vld [vmem:[%s2792_s1 + $0x60] sm:$0xff] (!%p141_p2)   ;;  %v2332_v10 = vld [vmem:[%s2792_s1 + $0x68] sm:$0xff] (!%p141_p2)  }
   0x8   : > { %2114 = vmatpush3.bf16.msra.mxu0 (!%p141_p2), %v2323_v1  ;;  %2019 = vmatprep.subr.bf16.mxu1 (!%p141_p2), %v2324_v2  ;;  %v2329_v7 = vld [vmem:[%s2792_s1 + $0x118] sm:$0xff] (!%p141_p2)   ;;  %v2331_v9 = vld [vmem:[%s2792_s1 + $0x120] sm:$0xff] (!%p141_p2)   ;;  %v2333_v13 = vld [vmem:[%s2792_s1 + $0x128] sm:$0xff] (!%p141_p2)  }
   0x9   : > { %2115 = vmatprep.subr.bf16.mxu0 (!%p141_p2), %v2325_v3  ;;  %v2334_v17 = vld [vmem:[%s2792_s1 + $0x70] sm:$0xff] (!%p141_p2)   ;;  %v2336_v19 = vld [vmem:[%s2792_s1 + $0x78] sm:$0xff] (!%p141_p2)   ;;  %v2338_v21 = vld [vmem:[%s2792_s1] sm:$0xff] (!%p141_p2)  }
   0xa   : > { %v2335_v18 = vld [vmem:[%s2792_s1 + $0x130] sm:$0xff] (!%p141_p2)   ;;  %v2337_v20 = vld [vmem:[%s2792_s1 + $0x138] sm:$0xff] (!%p141_p2)   ;;  %v2339_v24 = vld [vmem:[%s2792_s1 + $0x140] sm:$0xff] (!%p141_p2)  }
   0xb   : > { %2020 = vmatpush3.bf16.msra.mxu1 (!%p141_p2), %v2324_v2  ;;  %v2340_v29 = vld [vmem:[%s2792_s1 + $0x8] sm:$0xff] (!%p141_p2)   ;;  %v2342_v34 = vld [vmem:[%s2792_s1 + $0x10] sm:$0xff] (!%p141_p2)   ;;  %v2344_v43 = vld [vmem:[%s2792_s1 + $0x18] sm:$0xff] (!%p141_p2)  }
   0xc   : > { %2116 = vmatpush3.bf16.msra.mxu0 (!%p141_p2), %v2325_v3  ;;  %2021 = vmatprep.subr.bf16.mxu1 (!%p141_p2), %v2326_v4  ;;  %v2341_v30 = vld [vmem:[%s2792_s1 + $0x148] sm:$0xff] (!%p141_p2)   ;;  %v2343_v36 = vld [vmem:[%s2792_s1 + $0x150] sm:$0xff] (!%p141_p2)   ;;  %v2345_v44 = vld [vmem:[%s2792_s1 + $0x158] sm:$0xff] (!%p141_p2)  }
   0xd   : > { %s2796_s13 = smov (!%p168_p3, %s1649_s13), 1  ;;  %2117 = vmatprep.subr.bf16.mxu0 %v2327_v5  ;;  %v2346_v47 = vld [vmem:[%s2792_s1 + $0x20] sm:$0xff]   ;;  %v2348_v49 = vld [vmem:[%s2792_s1 + $0x28] sm:$0xff]   ;;  %v2350_v51 = vld [vmem:[%s2792_s1 + $0x30] sm:$0xff]  }
   0xe   : > { %s2313_s30 = smul.u32 160, %s2796_s13  ;;  %v2347_v48 = vld [vmem:[%s2792_s1 + $0x160] sm:$0xff]   ;;  %v2349_v50 = vld [vmem:[%s2792_s1 + $0x168] sm:$0xff]   ;;  %v2351_v52 = vld [vmem:[%s2792_s1 + $0x170] sm:$0xff]   ;;  %s1657_s20 = sshll.u32 %s2796_s13, 1 }
   0xf   : > { %2022 = vmatpush3.bf16.msra.mxu1 %v2326_v4  ;;  %v2352_v53 = vld [vmem:[%s2792_s1 + $0x38] sm:$0xff]   ;;  %v2354_v57 = vld [vmem:[%s2792_s1 + $0x80] sm:$0xff]   ;;  %v2356_v0 = vld [vmem:[%s2792_s1 + $0x88] sm:$0xff]   ;;  %s181_s23 = scalar_lea.vmem %s2794_s3, %s1657_s20 }
  0x10   : > { %2118 = vmatpush3.bf16.msra.mxu0 %v2327_v5  ;;  %2023 = vmatprep.subr.bf16.mxu1 %v2328_v6  ;;  %s2466_s10 = scalar_lea.vmem %s2791_s0, %s2313_s30  ;;  %v2353_v54 = vld [vmem:[%s2792_s1 + $0x178] sm:$0xff]   ;;  %v2355_v59 = vld [vmem:[%s2792_s1 + $0x180] sm:$0xff]   ;;  %v2357_v4 = vld [vmem:[%s2792_s1 + $0x188] sm:$0xff]  }
  0x11   : > { %2119 = vmatprep.subr.bf16.mxu0 %v2329_v7  ;;  %v211_v11 = vld [vmem:[%s2466_s10 + $0x1] sm:$0xff]  ;;  %v212_v12 = vld [vmem:[%s2466_s10 + $0x11] sm:$0xff] }
  0x12   : > { %v219_v14 = vpack.c.bf16 %v212_v12, %v211_v11  ;;  %v1747_v15 = vld [vmem:[%s2466_s10 + $0x21] sm:$0xff]  ;;  %v214_v22 = vld [vmem:[%s2466_s10 + $0x31] sm:$0xff] }
  0x13   : > { %2024 = vmatpush3.bf16.msra.mxu1 %v2328_v6  ;;  %v775_v16 = vpack.c.bf16 %v1747_v15, %v212_v12  ;;  %v1749_v23 = vld [vmem:[%s2466_s10 + $0x41] sm:$0xff]  ;;  %v2497_v25 = vpack.c.bf16 %v214_v22, %v1747_v15  ;;  %v216_v26 = vld [vmem:[%s2466_s10 + $0x51] sm:$0xff] }
  0x14   : > { %2120 = vmatpush3.bf16.msra.mxu0 %v2329_v7  ;;  %2025 = vmatprep.subr.bf16.mxu1 %v2330_v8  ;;  %v776_v27 = vpack.c.bf16 %v1749_v23, %v214_v22  ;;  %v1751_v28 = vld [vmem:[%s2466_s10 + $0x61] sm:$0xff]  ;;  %v2507_v31 = vpack.c.bf16 %v216_v26, %v1749_v23  ;;  %v218_v33 = vld [vmem:[%s2466_s10 + $0x71] sm:$0xff] }
  0x15   : > { %2121 = vmatprep.subr.bf16.mxu0 %v2331_v9  ;;  %2033 = vmatprep.mubr.bf16.mxu1 %v219_v14  ;;  %v777_v32 = vpack.c.bf16 %v1751_v28, %v216_v26  ;;  %v2515_v35 = vld [vmem:[%s2466_s10 + $0x81] sm:$0xff]  ;;  %v2521_v37 = vpack.c.bf16 %v218_v33, %v1751_v28  ;;  %v2525_v39 = vld [vmem:[%s2466_s10 + $0x10] sm:$0xff]  ;;  %v2368_v26 = vld [vmem:[%s2792_s1 + $0xb8] sm:$0xff]  }
  0x16   : > { %2129 = vmatprep.mubr.bf16.mxu0 %v775_v16  ;;  %v183_v38 = vld [vmem:[%s2466_s10] sm:$0xff]  ;;  %v778_v40 = vpack.c.bf16 %v2515_v35, %v218_v33  ;;  %v2529_v41 = vld [vmem:[%s2466_s10 + $0x12] sm:$0xff]  ;;  %v2365_v22 = vld [vmem:[%s2792_s1 + $0x1a8] sm:$0xff]  }
  0x17   : > { %2026 = vmatpush3.bf16.msra.mxu1 %v2330_v8  ;;  %v2532_v42 = vld [vmem:[%s2466_s10 + $0x22] sm:$0xff]  ;;  %v191_v45 = vpack.c.bf16 %v2525_v39, %v183_v38  ;;  %v2572_v56 = vld [vmem:[%s2466_s10 + $0x30] sm:$0xff]  ;;  %v2360_v16 = vld [vmem:[%s2792_s1 + $0x98] sm:$0xff]  }
  0x18   : > { %2122 = vmatpush3.bf16.msra.mxu0 %v2331_v9  ;;  %2027 = vmatprep.subr.bf16.mxu1 %v2332_v10  ;;  %v925_v46 = vpack.c.bf16 %v2532_v42, %v2529_v41  ;;  %v2569_v55 = vld [vmem:[%s2466_s10 + $0x20] sm:$0xff]  ;;  %v2578_v58 = vld [vmem:[%s2466_s10 + $0x32] sm:$0xff]  ;;  %v2373_v33 = vld [vmem:[%s2792_s1 + $0x1c8] sm:$0xff]  }
  0x19   : > { %2123 = vmatprep.subr.bf16.mxu0 %v2333_v13  ;;  %v2584_v60 = vld [vmem:[%s2466_s10 + $0x42] sm:$0xff]  ;;  %v2590_v62 = vld [vmem:[%s2466_s10 + $0x50] sm:$0xff]  ;;  %v192_v63 = vpack.c.bf16 %v2572_v56, %v2569_v55 }
  0x1a   : > { %v2587_v61 = vld [vmem:[%s2466_s10 + $0x40] sm:$0xff]  ;;  %v2598_v1 = vld [vmem:[%s2466_s10 + $0x52] sm:$0xff]  ;;  %v926_v2 = vpack.c.bf16 %v2584_v60, %v2578_v58 }
  0x1b   : > { %2028 = vmatpush3.bf16.msra.mxu1 %v2332_v10  ;;  %v2603_v3 = vld [vmem:[%s2466_s10 + $0x62] sm:$0xff]  ;;  %v2610_v5 = vpack.c.bf16 %v2590_v62, %v2587_v61  ;;  %v2358_v7 = vld [vmem:[%s2792_s1 + $0x90] sm:$0xff]  }
  0x1c   : > { %2124 = vmatpush3.bf16.msra.mxu0 %v2333_v13  ;;  %2029 = vmatprep.subr.bf16.mxu1 %v2334_v17  ;;  %v2613_v6 = vld [vmem:[%s2466_s10 + $0x60] sm:$0xff]  ;;  %v927_v8 = vpack.c.bf16 %v2603_v3, %v2598_v1  ;;  %v2621_v9 = vld [vmem:[%s2466_s10 + $0x70] sm:$0xff] }
  0x1d   : > { %2125 = vmatprep.subr.bf16.mxu0 %v2335_v18  ;;  %v2624_v10 = vld [vmem:[%s2466_s10 + $0x72] sm:$0xff]  ;;  %v2627_v11 = vld [vmem:[%s2466_s10 + $0x82] sm:$0xff]  ;;  %v194_v13 = vpack.c.bf16 %v2621_v9, %v2613_v6 }
  0x1e   : > { %v2359_v12 = vld [vmem:[%s2792_s1 + $0x190] sm:$0xff]   ;;  %v466_v14 = vld [vmem:[%s2466_s10 + $0x2] sm:$0xff]  ;;  %v928_v15 = vpack.c.bf16 %v2627_v11, %v2624_v10 }
  0x1f   : > { %2030 = vmatpush3.bf16.msra.mxu1 %v2334_v17  ;;  %v2361_v17 = vld [vmem:[%s2792_s1 + $0x198] sm:$0xff]   ;;  %v2366_v23 = vld [vmem:[%s2792_s1 + $0xb0] sm:$0xff]   ;;  %v2370_v28 = vld [vmem:[%s2792_s1 + $0xc0] sm:$0xff]  }
  0x20   : > { %2126 = vmatpush3.bf16.msra.mxu0 %v2335_v18  ;;  %2031 = vmatprep.subr.bf16.mxu1 %v2336_v19  ;;  %v474_v18 = vpack.c.bf16 %v2529_v41, %v466_v14  ;;  %v2695_v38 = vld [vmem:[%s2466_s10 + $0x80] sm:$0xff]  ;;  %v2375_v41 = vld [vmem:[%s2792_s1 + $0x1d0] sm:$0xff]  }
  0x21   : > { %2127 = vmatprep.subr.bf16.mxu0 %v2337_v20 }
  0x23   : > { %2032 = vmatpush3.bf16.msra.mxu1 %v2336_v19  ;;  %v2362_v19 = vld [vmem:[%s2792_s1 + $0xa0] sm:$0xff]  }
  0x24   : > { %2128 = vmatpush3.bf16.msra.mxu0 %v2337_v20  ;;  %2041 = vmatprep.subr.bf16.mxu1 %v2338_v21  ;;  %v2363_v20 = vld [vmem:[%s2792_s1 + $0x1a0] sm:$0xff]  }
  0x25   : > { %2137 = vmatprep.subr.bf16.mxu0 %v2339_v24 }
  0x26   : > { %2034 = vmatmul.mubr.bf16.vlgmr.msra.gmra.mrb[0].mxu1 %v2497_v25 }
  0x27   : > { %2042 = vmatpush3.bf16.msra.mxu1 %v2338_v21  ;;  %2130 = vmatmul.mubr.bf16.vlgmr.msra.gmra.mrb[0].mxu0 %v776_v27  ;;  %v2364_v21 = vld [vmem:[%s2792_s1 + $0xa8] sm:$0xff]   ;;  %v2369_v27 = vld [vmem:[%s2792_s1 + $0x1b8] sm:$0xff]  }
  0x28   : > { %2138 = vmatpush3.bf16.msra.mxu0 %v2339_v24  ;;  %2043 = vmatprep.subr.bf16.mxu1 %v2340_v29  ;;  %v2367_v24 = vld [vmem:[%s2792_s1 + $0x1b0] sm:$0xff]  }
  0x29   : > { %2139 = vmatprep.subr.bf16.mxu0 %v2341_v30  ;;  %2037 = vmatprep.mubr.bf16.mxu1 %v2507_v31 }
  0x2a   : > { %2133 = vmatprep.mubr.bf16.mxu0 %v777_v32  ;;  %v2372_v32 = vld [vmem:[%s2792_s1 + $0xc8] sm:$0xff]  }
  0x2b   : > { %2044 = vmatpush3.bf16.msra.mxu1 %v2340_v29  ;;  %v2371_v29 = vld [vmem:[%s2792_s1 + $0x1c0] sm:$0xff]  }
  0x2c   : > { %2140 = vmatpush3.bf16.msra.mxu0 %v2341_v30  ;;  %2045 = vmatprep.subr.bf16.mxu1 %v2342_v34  ;;  %v2677_v30 = vpack.c.bf16 %v2578_v58, %v2532_v42  ;;  %v2704_v42 = vpack.c.bf16 %v2624_v10, %v2603_v3  ;;  %v1849_v58 = vld [vmem:[%s2466_s10 + $0x91] sm:$0xff] }
  0x2d   : > { %2141 = vmatprep.subr.bf16.mxu0 %v2343_v36 }
  0x2e   : > { %2038 = vmatmul.mubr.bf16.gmra.mrb[4].mxu1 %v2521_v37 }
  0x2f   : > { %2046 = vmatpush3.bf16.msra.mxu1 %v2342_v34  ;;  %2134 = vmatmul.mubr.bf16.gmra.mrb[4].mxu0 %v778_v40  ;;  %v2687_v34 = vpack.c.bf16 %v2598_v1, %v2584_v60  ;;  %v1817_v40 = vld [vmem:[%s2466_s10 + $0x90] sm:$0xff]  ;;  %v1229_v60 = vpack.c.bf16 %v1849_v58, %v2515_v35  ;;  %v2391_v35 = vld [vmem:[%s2792_s1 + $0x228] sm:$0xff]  }
  0x30   : > { %2142 = vmatpush3.bf16.msra.mxu0 %v2343_v36  ;;  %2047 = vmatprep.subr.bf16.mxu1 %v2344_v43  ;;  %v2374_v36 = vld [vmem:[%s2792_s1 + $0xd0] sm:$0xff]  }
  0x31   : > { %2143 = vmatprep.subr.bf16.mxu0 %v2345_v44  ;;  %2057 = vmatprep.mubr.bf16.mxu1 %v191_v45  ;;  %v2377_v45 = vld [vmem:[%s2792_s1 + $0x1d8] sm:$0xff]  }
  0x32   : > { %2153 = vmatprep.mubr.bf16.mxu0 %v925_v46  ;;  %v625_v46 = vpack.c.bf16 %v2569_v55, %v2525_v39  ;;  %v2380_v39 = vld [vmem:[%s2792_s1 + $0xe8] sm:$0xff]  }
  0x33   : > { %2048 = vmatpush3.bf16.msra.mxu1 %v2344_v43  ;;  %v1079_v43 = vpack.c.bf16 %v1817_v40, %v2695_v38  ;;  %v2387_v55 = vld [vmem:[%s2792_s1 + $0x208] sm:$0xff]  }
  0x34   : > { %2144 = vmatpush3.bf16.msra.mxu0 %v2345_v44  ;;  %2049 = vmatprep.subr.bf16.mxu1 %v2346_v47  ;;  %v2376_v44 = vld [vmem:[%s2792_s1 + $0xd8] sm:$0xff]  }
  0x35   : > { %2145 = vmatprep.subr.bf16.mxu0 %v2347_v48 }
  0x37   : > { %2050 = vmatpush3.bf16.msra.mxu1 %v2346_v47  ;;  %v2378_v47 = vld [vmem:[%s2792_s1 + $0xe0] sm:$0xff]  }
  0x38   : > { %2146 = vmatpush3.bf16.msra.mxu0 %v2347_v48  ;;  %2051 = vmatprep.subr.bf16.mxu1 %v2348_v49  ;;  %v2379_v48 = vld [vmem:[%s2792_s1 + $0x1e0] sm:$0xff]  }
  0x39   : > { %2147 = vmatprep.subr.bf16.mxu0 %v2349_v50 }
  0x3b   : > { %2052 = vmatpush3.bf16.msra.mxu1 %v2348_v49  ;;  %v2381_v49 = vld [vmem:[%s2792_s1 + $0x1e8] sm:$0xff]  }
  0x3c   : > { %2148 = vmatpush3.bf16.msra.mxu0 %v2349_v50  ;;  %2053 = vmatprep.subr.bf16.mxu1 %v2350_v51  ;;  %v2382_v50 = vld [vmem:[%s2792_s1 + $0xf0] sm:$0xff]  }
  0x3d   : > { %2149 = vmatprep.subr.bf16.mxu0 %v2351_v52 }
  0x3f   : > { %2054 = vmatpush3.bf16.msra.mxu1 %v2350_v51  ;;  %v2384_v51 = vld [vmem:[%s2792_s1 + $0xf8] sm:$0xff]  }
  0x40   : > { %2150 = vmatpush3.bf16.msra.mxu0 %v2351_v52  ;;  %2055 = vmatprep.subr.bf16.mxu1 %v2352_v53  ;;  %v2385_v52 = vld [vmem:[%s2792_s1 + $0x1f8] sm:$0xff]  }
  0x41   : > { %2151 = vmatprep.subr.bf16.mxu0 %v2353_v54 }
  0x43   : > { %2056 = vmatpush3.bf16.msra.mxu1 %v2352_v53  ;;  %v2386_v53 = vld [vmem:[%s2792_s1 + $0x200] sm:$0xff]  }
  0x44   : > { %2152 = vmatpush3.bf16.msra.mxu0 %v2353_v54  ;;  %2065 = vmatprep.subr.bf16.mxu1 %v2354_v57  ;;  %v626_v54 = vpack.c.bf16 %v2587_v61, %v2572_v56  ;;  %v2388_v56 = vld [vmem:[%s2792_s1 + $0x210] sm:$0xff]  }
  0x45   : > { %2161 = vmatprep.subr.bf16.mxu0 %v2355_v59  ;;  %v2392_v61 = vld [vmem:[%s2792_s1 + $0x230] sm:$0xff]  }
  0x46   : > { %2058 = vmatmul.mubr.bf16.vlgmr.msra.gmra.mrb[0].mxu1 %v192_v63 }
  0x47   : > { %2066 = vmatpush3.bf16.msra.mxu1 %v2354_v57  ;;  %2154 = vmatmul.mubr.bf16.vlgmr.msra.gmra.mrb[0].mxu0 %v926_v2  ;;  %v627_v57 = vpack.c.bf16 %v2613_v6, %v2590_v62  ;;  %v2393_v62 = vld [vmem:[%s2792_s1 + $0x238] sm:$0xff]  }
  0x48   : > { %2162 = vmatpush3.bf16.msra.mxu0 %v2355_v59  ;;  %2067 = vmatprep.subr.bf16.mxu1 %v2356_v0  ;;  %v628_v59 = vpack.c.bf16 %v2695_v38, %v2621_v9 }
  0x49   : > { %2163 = vmatprep.subr.bf16.mxu0 %v2357_v4  ;;  %2061 = vmatprep.mubr.bf16.mxu1 %v2610_v5 }
  0x4a   : > { %2157 = vmatprep.mubr.bf16.mxu0 %v927_v8 }
  0x4b   : > { %2068 = vmatpush3.bf16.msra.mxu1 %v2356_v0 }
  0x4c   : > { %2164 = vmatpush3.bf16.msra.mxu0 %v2357_v4  ;;  %2069 = vmatprep.subr.bf16.mxu1 %v2358_v7 }
  0x4d   : > { %2165 = vmatprep.subr.bf16.mxu0 %v2359_v12 }
  0x4e   : > { %2062 = vmatmul.mubr.bf16.gmra.mrb[4].mxu1 %v194_v13 }
  0x4f   : > { %2070 = vmatpush3.bf16.msra.mxu1 %v2358_v7  ;;  %2158 = vmatmul.mubr.bf16.gmra.mrb[4].mxu0 %v928_v15 }
  0x50   : > { %2166 = vmatpush3.bf16.msra.mxu0 %v2359_v12  ;;  %2071 = vmatprep.subr.bf16.mxu1 %v2360_v16 }
  0x51   : > { %2167 = vmatprep.subr.bf16.mxu0 %v2361_v17  ;;  %2081 = vmatprep.mubr.bf16.mxu1 %v474_v18 }
  0x52   : > { %2177 = vmatprep.mubr.bf16.mxu0 %v192_v63  ;;  %v1881_v63 = vld [vmem:[%s2466_s10 + $0x92] sm:$0xff]  ;;  %s1908_s10 = sshll.u32 %s2796_s13, 6 }
  0x53   : > { %2072 = vmatpush3.bf16.msra.mxu1 %v2360_v16  ;;  %v1379_v0 = vpack.c.bf16 %v1881_v63, %v2627_v11  ;;  %s177_s19 = scalar_lea.vmem %s2793_s2, %s1908_s10 }
  0x54   : > { %2168 = vmatpush3.bf16.msra.mxu0 %v2361_v17  ;;  %2073 = vmatprep.subr.bf16.mxu1 %v2362_v19 }
  0x55   : > { %2169 = vmatprep.subr.bf16.mxu0 %v2363_v20 }
  0x57   : > { %2074 = vmatpush3.bf16.msra.mxu1 %v2362_v19 }
  0x58   : > { %2170 = vmatpush3.bf16.msra.mxu0 %v2363_v20  ;;  %2075 = vmatprep.subr.bf16.mxu1 %v2364_v21 }
  0x59   : > { %2171 = vmatprep.subr.bf16.mxu0 %v2365_v22 }
  0x5b   : > { %2076 = vmatpush3.bf16.msra.mxu1 %v2364_v21 }
  0x5c   : > { %2172 = vmatpush3.bf16.msra.mxu0 %v2365_v22  ;;  %2077 = vmatprep.subr.bf16.mxu1 %v2366_v23 }
  0x5d   : > { %2173 = vmatprep.subr.bf16.mxu0 %v2367_v24 }
  0x5f   : > { %2078 = vmatpush3.bf16.msra.mxu1 %v2366_v23 }
  0x60   : > { %2174 = vmatpush3.bf16.msra.mxu0 %v2367_v24  ;;  %2079 = vmatprep.subr.bf16.mxu1 %v2368_v26 }
  0x61   : > { %2175 = vmatprep.subr.bf16.mxu0 %v2369_v27 }
  0x63   : > { %2080 = vmatpush3.bf16.msra.mxu1 %v2368_v26 }
  0x64   : > { %2176 = vmatpush3.bf16.msra.mxu0 %v2369_v27  ;;  %2089 = vmatprep.subr.bf16.mxu1 %v2370_v28 }
  0x65   : > { %2185 = vmatprep.subr.bf16.mxu0 %v2371_v29 }
  0x66   : > { %2082 = vmatmul.mubr.bf16.vlgmr.msra.gmra.mrb[0].mxu1 %v2677_v30 }
  0x67   : > { %2090 = vmatpush3.bf16.msra.mxu1 %v2370_v28  ;;  %2178 = vmatmul.mubr.bf16.vlgmr.msra.gmra.mrb[0].mxu0 %v2610_v5 }
  0x68   : > { %2186 = vmatpush3.bf16.msra.mxu0 %v2371_v29  ;;  %2091 = vmatprep.subr.bf16.mxu1 %v2372_v32 }
  0x69   : > { %2187 = vmatprep.subr.bf16.mxu0 %v2373_v33  ;;  %2085 = vmatprep.mubr.bf16.mxu1 %v2687_v34 }
  0x6a   : > { %2181 = vmatprep.mubr.bf16.mxu0 %v194_v13 }
  0x6b   : > { %2092 = vmatpush3.bf16.msra.mxu1 %v2372_v32 }
  0x6c   : > { %2188 = vmatpush3.bf16.msra.mxu0 %v2373_v33  ;;  %2093 = vmatprep.subr.bf16.mxu1 %v2374_v36 }
  0x6d   : > { %2189 = vmatprep.subr.bf16.mxu0 %v2375_v41 }
  0x6e   : > { %2086 = vmatmul.mubr.bf16.gmra.mrb[4].mxu1 %v2704_v42 }
  0x6f   : > { %2094 = vmatpush3.bf16.msra.mxu1 %v2374_v36  ;;  %2182 = vmatmul.mubr.bf16.gmra.mrb[4].mxu0 %v1079_v43 }
  0x70   : > { %2190 = vmatpush3.bf16.msra.mxu0 %v2375_v41  ;;  %2095 = vmatprep.subr.bf16.mxu1 %v2376_v44 }
  0x71   : > { %2191 = vmatprep.subr.bf16.mxu0 %v2377_v45  ;;  %2105 = vmatprep.mubr.bf16.mxu1 %v625_v46 }
  0x72   : > { %2201 = vmatprep.mubr.bf16.mxu0 %v2497_v25  ;;  %v2383_v25 = vld [vmem:[%s2792_s1 + $0x1f0] sm:$0xff]  }
  0x73   : > { %2096 = vmatpush3.bf16.msra.mxu1 %v2376_v44 }
  0x74   : > { %2192 = vmatpush3.bf16.msra.mxu0 %v2377_v45  ;;  %2097 = vmatprep.subr.bf16.mxu1 %v2378_v47 }
  0x75   : > { %2193 = vmatprep.subr.bf16.mxu0 %v2379_v48 }
  0x77   : > { %2098 = vmatpush3.bf16.msra.mxu1 %v2378_v47 }
  0x78   : > { %2194 = vmatpush3.bf16.msra.mxu0 %v2379_v48  ;;  %2099 = vmatprep.subr.bf16.mxu1 %v2380_v39 }
  0x79   : > { %2195 = vmatprep.subr.bf16.mxu0 %v2381_v49 }
  0x7b   : > { %2100 = vmatpush3.bf16.msra.mxu1 %v2380_v39 }
  0x7c   : > { %2196 = vmatpush3.bf16.msra.mxu0 %v2381_v49  ;;  %2101 = vmatprep.subr.bf16.mxu1 %v2382_v50 }
  0x7d   : > { %2197 = vmatprep.subr.bf16.mxu0 %v2383_v25 }
  0x7f   : > { %2102 = vmatpush3.bf16.msra.mxu1 %v2382_v50 }
  0x80   : > { %2198 = vmatpush3.bf16.msra.mxu0 %v2383_v25  ;;  %2103 = vmatprep.subr.bf16.mxu1 %v2384_v51 }
  0x81   : > { %2199 = vmatprep.subr.bf16.mxu0 %v2385_v52 }
  0x83   : > { %2104 = vmatpush3.bf16.msra.mxu1 %v2384_v51 }
  0x84   : > { %2200 = vmatpush3.bf16.msra.mxu0 %v2385_v52  ;;  %2233 = vmatprep.subr.bf16.mxu1 %v2386_v53 }
  0x85   : > { %2209 = vmatprep.subr.bf16.mxu0 %v2386_v53 }
  0x86   : > { %2106 = vmatmul.mubr.bf16.vlgmr.msra.gmra.mrb[0].mxu1 %v626_v54 }
  0x87   : > { %2202 = vmatmul.mubr.bf16.vlgmr.msra.gmra.mrb[0].mxu0 %v2507_v31  ;;  %2241 = vmatpush3.bf16.msra.mxu1 %v2386_v53  ;;  %v2389_v31 = vld [vmem:[%s2792_s1 + $0x218] sm:$0xff]  }
  0x88   : > { %2210 = vmatpush3.bf16.msra.mxu0 %v2386_v53  ;;  %2234 = vmatprep.subr.bf16.mxu1 %v2387_v55 }
  0x89   : > { %2211 = vmatprep.subr.bf16.mxu0 %v2387_v55  ;;  %2109 = vmatprep.mubr.bf16.mxu1 %v627_v57 }
  0x8a   : > { %2205 = vmatprep.mubr.bf16.mxu0 %v2521_v37  ;;  %v2390_v37 = vld [vmem:[%s2792_s1 + $0x220] sm:$0xff]  }
  0x8b   : > { %2242 = vmatpush3.bf16.msra.mxu1 %v2387_v55 }
  0x8c   : > { %2212 = vmatpush3.bf16.msra.mxu0 %v2387_v55  ;;  %2235 = vmatprep.subr.bf16.mxu1 %v2388_v56 }
  0x8d   : > { %2213 = vmatprep.subr.bf16.mxu0 %v2388_v56 }
  0x8e   : > { %2110 = vmatmul.mubr.bf16.gmra.mrb[4].mxu1 %v628_v59 }
  0x8f   : > { %2206 = vmatmul.mubr.bf16.gmra.mrb[4].mxu0 %v1229_v60  ;;  %2243 = vmatpush3.bf16.msra.mxu1 %v2388_v56 }
  0x90   : > { %2214 = vmatpush3.bf16.msra.mxu0 %v2388_v56  ;;  %2236 = vmatprep.subr.bf16.mxu1 %v2389_v31 }
  0x91   : > { %2215 = vmatprep.subr.bf16.mxu0 %v2389_v31  ;;  %2225 = vmatprep.mubr.bf16.mxu0 %v2677_v30 }
  0x92   : > { %2229 = vmatprep.mubr.bf16.mxu1 %v2704_v42 }
  0x93   : > { %2244 = vmatpush3.bf16.msra.mxu1 %v2389_v31 }
  0x94   : > { %2216 = vmatpush3.bf16.msra.mxu0 %v2389_v31  ;;  %2237 = vmatprep.subr.bf16.mxu1 %v2390_v37 }
  0x95   : > { %2217 = vmatprep.subr.bf16.mxu0 %v2390_v37 }
  0x97   : > { %2245 = vmatpush3.bf16.msra.mxu1 %v2390_v37 }
  0x98   : > { %2218 = vmatpush3.bf16.msra.mxu0 %v2390_v37  ;;  %2238 = vmatprep.subr.bf16.mxu1 %v2391_v35 }
  0x99   : > { %2219 = vmatprep.subr.bf16.mxu0 %v2391_v35 }
  0x9b   : > { %2246 = vmatpush3.bf16.msra.mxu1 %v2391_v35 }
  0x9c   : > { %2220 = vmatpush3.bf16.msra.mxu0 %v2391_v35  ;;  %2239 = vmatprep.subr.bf16.mxu1 %v2392_v61 }
  0x9d   : > { %2221 = vmatprep.subr.bf16.mxu0 %v2392_v61 }
  0x9f   : > { %2247 = vmatpush3.bf16.msra.mxu1 %v2392_v61 }
  0xa0   : > { %2222 = vmatpush3.bf16.msra.mxu0 %v2392_v61  ;;  %2240 = vmatprep.subr.bf16.mxu1 %v2393_v62 }
  0xa1   : > { %2223 = vmatprep.subr.bf16.mxu0 %v2393_v62 }
  0xa3   : > { %2248 = vmatpush3.bf16.msra.mxu1 %v2393_v62 }
  0xa4   : > { %2224 = vmatpush3.bf16.msra.mxu0 %v2393_v62 }
  0xa6   : > { %2230 = vmatmul.mubr.bf16.vlgmr.msra.gmra.mrb[8].mxu1 %v1379_v0 }
  0xa7   : > { %2226 = vmatmul.mubr.bf16.vlgmr.msra.gmra.mrb[0].mxu0 %v2687_v34 }
 0x159   : > { %v2107_v1 = vpop.f32.mrb[0].mxu1 }
 0x15a   : > { %v728_v2 = vpop.f32.mrb[1].mxu1 }
 0x15b   : > { %v2108_v3 = vpop.f32.mrb[2].mxu1 }
 0x15c   : > { %v731_v4 = vpop.f32.mrb[3].mxu1 }
 0x161   : > { %v2111_v5 = vpop.f32.mrb[4].mxu1 }
 0x162   : > { %v2207_v6 = vpop.f32.mrb[4].mxu0  ;;  %v744_v7 = vpop.f32.mrb[5].mxu1 }
 0x163   : > { %v2253_v8 = vadd.f32 %v2207_v6, %v2111_v5  ;;  %v1345_v9 = vpop.f32.mrb[5].mxu0  ;;  %v2112_v10 = vpop.f32.mrb[6].mxu1 }
 0x164   : > { %v2255_v12 = vadd.f32 %v1345_v9, %v744_v7  ;;  %v2208_v13 = vpop.f32.mrb[6].mxu0  ;;  %v747_v14 = vpop.f32.mrb[7].mxu1 }
 0x165   : > { %v2257_v11 = vadd.f32 %v2208_v13, %v2112_v10  ;;  %v1348_v15 = vpop.f32.mrb[7].mxu0 }
 0x166   : > { %v2259_v16 = vadd.f32 %v1348_v15, %v747_v14 }
 0x179   : > { %v2231_v17 = vpop.f32.mrb[8].mxu1 }
 0x17a   : > { %v2227_v18 = vpop.f32.mrb[0].mxu0  ;;  %v2254_v19 = vadd.f32 %v2253_v8, %v2231_v17  ;;  %v1495_v20 = vpop.f32.mrb[9].mxu1 }
 0x17b   : > { %v2249_v21 = vadd.f32 %v2227_v18, %v2107_v1  ;;  %v1479_v22 = vpop.f32.mrb[1].mxu0  ;;  %v2256_v23 = vadd.f32 %v2255_v12, %v1495_v20  ;;  %v2232_v24 = vpop.f32.mrb[10].mxu1 }
 0x17c   : > { %1524 = vst [vmem:[%s177_s19 + $0x30] sm:$0xff] %v2254_v19  ;;  %v2250_v26 = vadd.f32 %v1479_v22, %v728_v2  ;;  %v2228_v27 = vpop.f32.mrb[2].mxu0  ;;  %v2258_v28 = vadd.f32 %v2257_v11, %v2232_v24  ;;  %v1498_v29 = vpop.f32.mrb[11].mxu1  ;;  %v1545_v51 = vmul.f32 %v2254_v19, %v2254_v19 }
 0x17d   : > { %1520 = vst [vmem:[%s177_s19 + $0x10] sm:$0xff] %v2249_v21  ;;  %1522 = vst [vmem:[%s177_s19 + $0x20] sm:$0xff] %v2256_v23  ;;  %v2251_v30 = vadd.f32 %v2228_v27, %v2108_v3  ;;  %v1482_v32 = vpop.f32.mrb[3].mxu0  ;;  %v2260_v33 = vadd.f32 %v2259_v16, %v1498_v29  ;;  %v1541_v41 = vmul.f32 %v2249_v21, %v2249_v21 }
 0x17e   : > { %1518 = vst [vmem:[%s177_s19] sm:$0xff] %v2250_v26  ;;  %1525 = vst [vmem:[%s177_s19 + $0x38] sm:$0xff] %v2258_v28  ;;  %v2252_v34 = vadd.f32 %v1482_v32, %v731_v4  ;;  %v1539_v36 = vmul.f32 %v2250_v26, %v2250_v26  ;;  %v1543_v47 = vmul.f32 %v2256_v23, %v2256_v23 }
 0x17f   : > { %1521 = vst [vmem:[%s177_s19 + $0x18] sm:$0xff] %v2251_v30  ;;  %1523 = vst [vmem:[%s177_s19 + $0x28] sm:$0xff] %v2260_v33  ;;  %v1542_v44 = vmul.f32 %v2251_v30, %v2251_v30  ;;  %v1544_v50 = vmul.f32 %v2260_v33, %v2260_v33  ;;  %v1546_v54 = vmul.f32 %v2258_v28, %v2258_v28 }
 0x180   : > { %1519 = vst [vmem:[%s177_s19 + $0x8] sm:$0xff] %v2252_v34  ;;  %v1526_v38 = vadd.f32 %v2252_v34, %v2250_v26  ;;  %v1540_v40 = vmul.f32 %v2252_v34, %v2252_v34 }
 0x182   : > { %v1527_v42 = vadd.f32 %v2249_v21, %v1526_v38  ;;  %v1547_v43 = vadd.f32 %v1540_v40, %v1539_v36 }
 0x184   : > { %v1548_v45 = vadd.f32 %v1547_v43, %v1541_v41  ;;  %v1528_v46 = vadd.f32 %v2251_v30, %v1527_v42 }
 0x186   : > { %v1529_v48 = vadd.f32 %v2256_v23, %v1528_v46  ;;  %v1549_v39 = vadd.f32 %v1548_v45, %v1542_v44 }
 0x188   : > { %v1530_v49 = vadd.f32 %v2260_v33, %v1529_v48  ;;  %v1550_v25 = vadd.f32 %v1549_v39, %v1543_v47 }
 0x18a   : > { %v1531_v52 = vadd.f32 %v2254_v19, %v1530_v49  ;;  %v1551_v53 = vadd.f32 %v1550_v25, %v1544_v50 }
 0x18c   : > { %v1532_v55 = vadd.f32 %v2258_v28, %v1531_v52  ;;  %v1552_v57 = vadd.f32 %v1551_v53, %v1545_v51 }
 0x18e   : > { %v1533_v58 = vrot.slane %v1532_v55, 4  ;;  %v1553_v56 = vadd.f32 %v1552_v57, %v1546_v54 }
 0x190   : > { %v1534_v59 = vadd.f32 %v1533_v58, %v1532_v55  ;;  %v1554_v60 = vrot.slane %v1553_v56, 4 }
 0x192   : > { %v1535_v31 = vrot.slane %v1534_v59, 2  ;;  %v1555_v37 = vadd.f32 %v1554_v60, %v1553_v56 }
 0x194   : > { %v1536_v35 = vadd.f32 %v1535_v31, %v1534_v59  ;;  %v1556_v61 = vrot.slane %v1555_v37, 2 }
 0x196   : > { %v1537_v62 = vrot.slane %v1536_v35, 1  ;;  %v1557_v63 = vadd.f32 %v1556_v61, %v1555_v37 }
 0x198   : > { %v1558_v0 = vrot.slane %v1557_v63, 1  ;;  %v1538_v1 = vadd.f32 %v1537_v62, %v1536_v35 }
 0x19a   : > { %v1559_v2 = vadd.f32 %v1558_v0, %v1557_v63 }
 0x19c   : > { %v1561_v3 = vsel %vm1560_vm0, %v1538_v1, %v1559_v2 }
 0x19d   : > { %1562 = vst [vmem:[%s181_s23] sm:$0x3] %v1561_v3 }
 0x19e PF: > { %s14_s12 = sadd.s32 1, %s2400_s12  }
 0x19f   : > { %p11_p4 = scmp.ge.s32.totalorder %s14_s12, 4  }
 0x1a1   :  { %13 = sbr.rel (!%p11_p4) target bundleno = 1 (0x1), region = 80 }

</bundles_post_ra>
